<compile_context>
chip_gen: v7x
topology: tpu7x:2x2x1
jax: 0.10.0
libtpu: 0.0.40
codegen_flags: <defaults>
</compile_context>

<pallas_src>
import functools
import math

import jax
import jax.numpy as jnp
import numpy as np
from jax import lax
from jax.experimental import pallas as pl
from jax.experimental.pallas import tpu as pltpu

N_INPUT = 82
N_HIDDEN = 24          # Transformer.n
DIM_K = 4
DIM_V = 18
N_HEADS = 2
DK = DIM_K // N_HEADS  # 2
DV = DIM_V // N_HEADS  # 9
N_OUT = 2
SCALE = 1.0 / math.sqrt(DK)  # MultiHeadSelfAttention._norm_fact


def _round_up(a, m):
    return ((a + m - 1) // m) * m


# ----------------------------- in-kernel math -------------------------------
def _fast_recip(x):
    # EUP approximate reciprocal (~2^-12 rel err) + one Newton step (~1e-7).
    r = pl.reciprocal(x, approx=True)
    return r * (2.0 - x * r)


def _gelu(x):
    # Exact (erf-based, like torch F.gelu default) GELU.
    # GELU(x) = x * Phi(x); Phi from Abramowitz & Stegun 7.1.25 erf
    # (|err| <= 2.5e-5), built only from abs/mul/add/exp/select so it lowers
    # cleanly in Mosaic; the divide uses the EUP approx reciprocal + Newton.
    p = 0.47047
    a1, a2, a3 = 0.3480242, -0.0958798, 0.7478556
    z = jnp.abs(x) * 0.7071067811865476            # |x| / sqrt(2)
    t = _fast_recip(1.0 + p * z)
    poly = ((a3 * t + a2) * t + a1) * t
    tail = (0.5 * poly) * jnp.exp(-0.5 * (x * x))  # Phi(-|x|)
    phi = jnp.where(x >= 0.0, 1.0 - tail, tail)
    return x * phi


# --------------------------------- kernel -----------------------------------
def transformer_kernel(x_ref, w1_ref, b1_ref, wf_ref, w5e_ref, w5o_ref,
                       b5_ref, o_ref):
    f32 = jnp.float32

    # fc1 + GELU with the batch on the lane axis:  h^T = W1 @ x_tile^T + b1
    # -> (24, TB).  Contraction over dim 1 of BOTH operands: the input-tile
    # transpose happens on-chip (MXU/vxpose path), no host-side transpose.
    hT = lax.dot_general(w1_ref[...], x_ref[...],
                         dimension_numbers=(((1,), (1,)), ((), ())),
                         preferred_element_type=f32)
    hT = _gelu(hT + b1_ref[...])
    # nn.Dropout(0.05): identity at inference time.
    # TODO(synk): training-mode dropout (random mask) not implemented.

    # Fused bias-free q/k/v projection.  Row layout (packed once on the host):
    #   0:2  q0 * 1/sqrt(dk)    2:4  q1 * 1/sqrt(dk)
    #   4:6  k0 - k1            6:15 v0 - v1           15:24 v1
    qkv = jnp.dot(wf_ref[...], hT, preferred_element_type=f32)       # (24, TB)
    q0 = qkv[0:DK, :]
    q1 = qkv[DK:2 * DK, :]
    kd = qkv[2 * DK:3 * DK, :]
    vd = qkv[3 * DK:3 * DK + DV, :]
    v1 = qkv[3 * DK + DV:3 * DK + 2 * DV, :]

    # 2-key softmax == sigmoid of the score difference (exact identity):
    #   p_h = softmax([q_h.k0, q_h.k1])[0] = sigmoid(q_h . (k0 - k1))
    # sigmoid via the EUP tanh -> numerically stable for any score magnitude.
    d0 = jnp.sum(q0 * kd, axis=0, keepdims=True)                      # (1, TB)
    d1 = jnp.sum(q1 * kd, axis=0, keepdims=True)
    p0 = 0.5 * jnp.tanh(0.5 * d0) + 0.5
    p1 = 0.5 * jnp.tanh(0.5 * d1) + 0.5

    # att_h = p_h*v0 + (1-p_h)*v1 = v1 + p_h*(v0 - v1)
    g0 = _gelu(v1 + p0 * vd)                                          # (9, TB)
    g1 = _gelu(v1 + p1 * vd)                                          # (9, TB)

    # torch's head interleave (att.transpose(1,2).reshape) is folded into
    # fc5's even/odd columns -> two tiny MXU matmuls, no gather / one-hot.
    logits = (jnp.dot(w5e_ref[...], g0, preferred_element_type=f32) +
              jnp.dot(w5o_ref[...], g1, preferred_element_type=f32) +
              b5_ref[...])                                            # (2, TB)

    # final softmax over the 2-row class (sublane) axis; F.softmax dim=1.
    m = jnp.max(logits, axis=0, keepdims=True)
    e = jnp.exp(logits - m)
    inv = _fast_recip(jnp.sum(e, axis=0, keepdims=True))
    o_ref[...] = (e * inv).astype(o_ref.dtype)


# ----------------------------- one-time packing ------------------------------
def pack_params(params):
    """Pack torch-layout weights into the kernel layout (call once per model)."""
    w1, b1, wq, wk, wv, w5, b5 = params            # torch layout: (out, in)
    wfused = jnp.concatenate(
        [wq[:DK] * SCALE,          # q head 0, 1/sqrt(dk) pre-folded
         wq[DK:] * SCALE,          # q head 1
         wk[:DK] - wk[DK:],        # k0 - k1   (softmax-as-sigmoid fold)
         wv[:DV] - wv[DV:],        # v0 - v1
         wv[DV:]],                 # v1
        axis=0).astype(jnp.float32)                              # (24, 24)
    return (w1.astype(jnp.float32),                              # (24, 82)
            b1.reshape(-1, 1).astype(jnp.float32),               # (24, 1)
            wfused,
            w5[:, 0::2].astype(jnp.float32),                     # (2, 9) head-0 cols
            w5[:, 1::2].astype(jnp.float32),                     # (2, 9) head-1 cols
            b5.reshape(-1, 1).astype(jnp.float32))               # (2, 1)


def _choose_tile(batch, tb):
    """Batch-lane tile: big enough to amortize grid-step overhead, >=2 steps
    for v7x's two TensorCores when the batch allows, full block for tiny B."""
    tb = max(256, (tb // 256) * 256)
    if batch < 256:
        return batch                          # single full-array block
    tile = min(tb, (batch // 256) * 256)      # largest 256-multiple <= min(tb, B)
    if batch >= 512 and pl.cdiv(batch, tile) < 2:
        tile = _round_up(batch // 2, 256)     # split across both v7x TCs
    return tile


# -------------------------------- wrapper ------------------------------------
@functools.partial(jax.jit, static_argnames=("tb",))
def transformer_forward(x, packed, *, tb=2048):
    """x: (B, 82) float32 -> (B, 2) float32 class probabilities."""
    w1, b1c, wfused, w5e, w5o, b5c = packed
    B = x.shape[0]
    tile = _choose_tile(B, tb)
    grid = pl.cdiv(B, tile)

    def full(a):
        return pl.BlockSpec(a.shape, lambda i: (0, 0))

    outT = pl.pallas_call(
        transformer_kernel,
        out_shape=jax.ShapeDtypeStruct((N_OUT, B), jnp.float32),
        grid=(grid,),
        in_specs=[
            # x streamed in its natural (B, 82) layout; last dim == full dim.
            pl.BlockSpec((tile, N_INPUT), lambda i: (i, 0)),
            full(w1), full(b1c), full(wfused), full(w5e), full(w5o), full(b5c),
        ],
        out_specs=pl.BlockSpec((N_OUT, tile), lambda i: (0, i)),   # lane-dense
        compiler_params=pltpu.CompilerParams(
            dimension_semantics=("parallel",),
            vmem_limit_bytes=32 * 1024 * 1024),
    )(x.astype(jnp.float32), w1, b1c, wfused, w5e, w5o, b5c)

    return outT.T                              # (B, 2); tiny, fused under jit


# --------------------------- deterministic params ----------------------------
def init_params(key):
    def linear(k, fan_in, fan_out, bias=True):
        bound = 1.0 / math.sqrt(fan_in)
        kw, kb = jax.random.split(k)
        w = jax.random.uniform(kw, (fan_out, fan_in), jnp.float32, -bound, bound)
        b = (jax.random.uniform(kb, (fan_out,), jnp.float32, -bound, bound)
             if bias else None)
        return w, b

    k1, k2, k3, k4, k5 = jax.random.split(key, 5)
    w1, b1 = linear(k1, N_INPUT, N_HIDDEN)
    wq, _ = linear(k2, N_HIDDEN, DIM_K, bias=False)
    wk, _ = linear(k3, N_HIDDEN, DIM_K, bias=False)
    wv, _ = linear(k4, N_HIDDEN, DIM_V, bias=False)
    w5, b5 = linear(k5, DIM_V, N_OUT)
    return (w1, b1, wq, wk, wv, w5, b5)


# ------------------------------ pure-JAX reference ---------------------------
def reference_forward(x, params):
    w1, b1, wq, wk, wv, w5, b5 = params
    B = x.shape[0]
    h = jax.nn.gelu(x @ w1.T + b1, approximate=False)
    q = (h @ wq.T).reshape(B, N_HEADS, DK)
    k = (h @ wk.T).reshape(B, N_HEADS, DK)
    v = (h @ wv.T).reshape(B, N_HEADS, DV)
    dist = jnp.einsum("bid,bjd->bij", q, k) * SCALE
    dist = jax.nn.softmax(dist, axis=-1)
    att = jnp.einsum("bij,bjd->bid", dist, v)
    att = jnp.transpose(att, (0, 2, 1)).reshape(B, DIM_V)
    att = jax.nn.gelu(att, approximate=False)
    logits = att @ w5.T + b5
    return jax.nn.softmax(logits, axis=-1)


if __name__ == "__main__":
    key = jax.random.PRNGKey(0)
    kx, kp = jax.random.split(key)
    batch = 600   # exercises a 2-step grid (v7x split path) + ragged last block
    x = jax.random.normal(kx, (batch, N_INPUT), dtype=jnp.float32)
    params = init_params(kp)
    packed = pack_params(params)

    out = transformer_forward(x, packed)
    out = jax.block_until_ready(out)

    ref = reference_forward(x, params)
    np.testing.assert_allclose(np.asarray(out), np.asarray(ref),
                               rtol=1e-3, atol=1e-3)
    assert out.shape == (batch, N_OUT)
    print("KERNEL_OK")
</pallas_src>

<mosaic_0001>
module attributes {stable_mosaic.version = 11 : i64} {
  func.func @transformer_kernel(%arg0: i32, %arg1: memref<512x82xf32, #tpu.memory_space<vmem>>, %arg2: memref<24x82xf32, #tpu.memory_space<vmem>>, %arg3: memref<24x1xf32, #tpu.memory_space<vmem>>, %arg4: memref<24x24xf32, #tpu.memory_space<vmem>>, %arg5: memref<2x9xf32, #tpu.memory_space<vmem>>, %arg6: memref<2x9xf32, #tpu.memory_space<vmem>>, %arg7: memref<2x1xf32, #tpu.memory_space<vmem>>, %arg8: memref<2x512xf32, #tpu.memory_space<vmem>>) attributes {dimension_semantics = [#tpu.dimension_semantics<parallel>], iteration_bounds = array<i64: 2>, scalar_prefetch = 0 : i64, scratch_operands = 0 : i64, tpu.core_type = #tpu.core_type<tc>, window_params = [{transform_indices = @transform_0, window_bounds = array<i64: 512, 82>}, {pipeline_mode = #tpu.pipeline_mode<synchronous>, transform_indices = @transform_1, window_bounds = array<i64: 24, 82>}, {pipeline_mode = #tpu.pipeline_mode<synchronous>, transform_indices = @transform_2, window_bounds = array<i64: 24, 1>}, {pipeline_mode = #tpu.pipeline_mode<synchronous>, transform_indices = @transform_3, window_bounds = array<i64: 24, 24>}, {pipeline_mode = #tpu.pipeline_mode<synchronous>, transform_indices = @transform_4, window_bounds = array<i64: 2, 9>}, {pipeline_mode = #tpu.pipeline_mode<synchronous>, transform_indices = @transform_5, window_bounds = array<i64: 2, 9>}, {pipeline_mode = #tpu.pipeline_mode<synchronous>, transform_indices = @transform_6, window_bounds = array<i64: 2, 1>}, {transform_indices = @transform_7, window_bounds = array<i64: 2, 512>}]} {
    %c0 = arith.constant 0 : index
    %c0_0 = arith.constant 0 : index
    %0 = vector.load %arg2[%c0, %c0_0] : memref<24x82xf32, #tpu.memory_space<vmem>>, vector<24x82xf32>
    %c0_1 = arith.constant 0 : index
    %c0_2 = arith.constant 0 : index
    %1 = vector.load %arg1[%c0_1, %c0_2] : memref<512x82xf32, #tpu.memory_space<vmem>>, vector<512x82xf32>
    %cst = arith.constant dense<0.000000e+00> : vector<24x512xf32>
    %2 = tpu.matmul %0, %1, %cst {dimension_numbers = #tpu.dot_dimension_numbers<[1], [1], [0], [0], [0, 0, 1, 0], [], []>} : vector<24x82xf32>, vector<512x82xf32>, vector<24x512xf32> -> vector<24x512xf32>
    %c0_3 = arith.constant 0 : index
    %c0_4 = arith.constant 0 : index
    %3 = vector.load %arg3[%c0_3, %c0_4] : memref<24x1xf32, #tpu.memory_space<vmem>>, vector<24x1xf32>
    %4 = vector.broadcast %3 : vector<24x1xf32> to vector<24x512xf32>
    %5 = arith.addf %2, %4 : vector<24x512xf32>
    %6 = math.absf %5 : vector<24x512xf32>
    %cst_5 = arith.constant 0.707106769 : f32
    %7 = vector.broadcast %cst_5 : f32 to vector<24x512xf32>
    %8 = arith.mulf %6, %7 : vector<24x512xf32>
    %cst_6 = arith.constant 4.704700e-01 : f32
    %9 = vector.broadcast %cst_6 : f32 to vector<24x512xf32>
    %10 = arith.mulf %9, %8 : vector<24x512xf32>
    %cst_7 = arith.constant 1.000000e+00 : f32
    %11 = vector.broadcast %cst_7 : f32 to vector<24x512xf32>
    %12 = arith.addf %11, %10 : vector<24x512xf32>
    %13 = tpu.reciprocal %12 {approx = true} : vector<24x512xf32> -> vector<24x512xf32>
    %14 = arith.mulf %12, %13 : vector<24x512xf32>
    %cst_8 = arith.constant 2.000000e+00 : f32
    %15 = vector.broadcast %cst_8 : f32 to vector<24x512xf32>
    %16 = arith.subf %15, %14 : vector<24x512xf32>
    %17 = arith.mulf %13, %16 : vector<24x512xf32>
    %cst_9 = arith.constant 0.747855603 : f32
    %18 = vector.broadcast %cst_9 : f32 to vector<24x512xf32>
    %19 = arith.mulf %18, %17 : vector<24x512xf32>
    %cst_10 = arith.constant -9.587980e-02 : f32
    %20 = vector.broadcast %cst_10 : f32 to vector<24x512xf32>
    %21 = arith.addf %19, %20 : vector<24x512xf32>
    %22 = arith.mulf %21, %17 : vector<24x512xf32>
    %cst_11 = arith.constant 0.348024189 : f32
    %23 = vector.broadcast %cst_11 : f32 to vector<24x512xf32>
    %24 = arith.addf %22, %23 : vector<24x512xf32>
    %25 = arith.mulf %24, %17 : vector<24x512xf32>
    %cst_12 = arith.constant 5.000000e-01 : f32
    %26 = vector.broadcast %cst_12 : f32 to vector<24x512xf32>
    %27 = arith.mulf %26, %25 : vector<24x512xf32>
    %28 = arith.mulf %5, %5 : vector<24x512xf32>
    %cst_13 = arith.constant -5.000000e-01 : f32
    %29 = vector.broadcast %cst_13 : f32 to vector<24x512xf32>
    %30 = arith.mulf %29, %28 : vector<24x512xf32>
    %31 = math.exp %30 : vector<24x512xf32>
    %32 = arith.mulf %27, %31 : vector<24x512xf32>
    %cst_14 = arith.constant 0.000000e+00 : f32
    %33 = vector.broadcast %cst_14 : f32 to vector<24x512xf32>
    %34 = arith.cmpf oge, %5, %33 : vector<24x512xf32>
    %cst_15 = arith.constant 1.000000e+00 : f32
    %35 = vector.broadcast %cst_15 : f32 to vector<24x512xf32>
    %36 = arith.subf %35, %32 : vector<24x512xf32>
    %37 = arith.select %34, %36, %32 : vector<24x512xi1>, vector<24x512xf32>
    %38 = arith.mulf %5, %37 : vector<24x512xf32>
    %c0_16 = arith.constant 0 : index
    %c0_17 = arith.constant 0 : index
    %39 = vector.load %arg4[%c0_16, %c0_17] : memref<24x24xf32, #tpu.memory_space<vmem>>, vector<24x24xf32>
    %cst_18 = arith.constant dense<0.000000e+00> : vector<24x512xf32>
    %40 = tpu.matmul %39, %38, %cst_18 {dimension_numbers = #tpu.dot_dimension_numbers<[1], [0], [0], [1], [0, 0, 1, 1], [], []>} : vector<24x24xf32>, vector<24x512xf32>, vector<24x512xf32> -> vector<24x512xf32>
    %41 = vector.extract_strided_slice %40 {offsets = [0, 0], sizes = [2, 512], strides = [1, 1]} : vector<24x512xf32> to vector<2x512xf32>
    %42 = vector.extract_strided_slice %40 {offsets = [2, 0], sizes = [2, 512], strides = [1, 1]} : vector<24x512xf32> to vector<2x512xf32>
    %43 = vector.extract_strided_slice %40 {offsets = [4, 0], sizes = [2, 512], strides = [1, 1]} : vector<24x512xf32> to vector<2x512xf32>
    %44 = vector.extract_strided_slice %40 {offsets = [6, 0], sizes = [9, 512], strides = [1, 1]} : vector<24x512xf32> to vector<9x512xf32>
    %45 = vector.extract_strided_slice %40 {offsets = [15, 0], sizes = [9, 512], strides = [1, 1]} : vector<24x512xf32> to vector<9x512xf32>
    %46 = arith.mulf %41, %43 : vector<2x512xf32>
    %cst_19 = arith.constant dense<0.000000e+00> : vector<512xf32>
    %47 = vector.multi_reduction <add>, %46, %cst_19 [0] : vector<2x512xf32> to vector<512xf32>
    %48 = vector.shape_cast %47 : vector<512xf32> to vector<1x512xf32>
    %49 = arith.mulf %42, %43 : vector<2x512xf32>
    %cst_20 = arith.constant dense<0.000000e+00> : vector<512xf32>
    %50 = vector.multi_reduction <add>, %49, %cst_20 [0] : vector<2x512xf32> to vector<512xf32>
    %51 = vector.shape_cast %50 : vector<512xf32> to vector<1x512xf32>
    %cst_21 = arith.constant 5.000000e-01 : f32
    %52 = vector.broadcast %cst_21 : f32 to vector<1x512xf32>
    %53 = arith.mulf %52, %48 : vector<1x512xf32>
    %54 = math.tanh %53 : vector<1x512xf32>
    %cst_22 = arith.constant 5.000000e-01 : f32
    %55 = vector.broadcast %cst_22 : f32 to vector<1x512xf32>
    %56 = arith.mulf %55, %54 : vector<1x512xf32>
    %cst_23 = arith.constant 5.000000e-01 : f32
    %57 = vector.broadcast %cst_23 : f32 to vector<1x512xf32>
    %58 = arith.addf %56, %57 : vector<1x512xf32>
    %cst_24 = arith.constant 5.000000e-01 : f32
    %59 = vector.broadcast %cst_24 : f32 to vector<1x512xf32>
    %60 = arith.mulf %59, %51 : vector<1x512xf32>
    %61 = math.tanh %60 : vector<1x512xf32>
    %cst_25 = arith.constant 5.000000e-01 : f32
    %62 = vector.broadcast %cst_25 : f32 to vector<1x512xf32>
    %63 = arith.mulf %62, %61 : vector<1x512xf32>
    %cst_26 = arith.constant 5.000000e-01 : f32
    %64 = vector.broadcast %cst_26 : f32 to vector<1x512xf32>
    %65 = arith.addf %63, %64 : vector<1x512xf32>
    %66 = vector.broadcast %58 : vector<1x512xf32> to vector<9x512xf32>
    %67 = arith.mulf %66, %44 : vector<9x512xf32>
    %68 = arith.addf %45, %67 : vector<9x512xf32>
    %69 = math.absf %68 : vector<9x512xf32>
    %cst_27 = arith.constant 0.707106769 : f32
    %70 = vector.broadcast %cst_27 : f32 to vector<9x512xf32>
    %71 = arith.mulf %69, %70 : vector<9x512xf32>
    %cst_28 = arith.constant 4.704700e-01 : f32
    %72 = vector.broadcast %cst_28 : f32 to vector<9x512xf32>
    %73 = arith.mulf %72, %71 : vector<9x512xf32>
    %cst_29 = arith.constant 1.000000e+00 : f32
    %74 = vector.broadcast %cst_29 : f32 to vector<9x512xf32>
    %75 = arith.addf %74, %73 : vector<9x512xf32>
    %76 = tpu.reciprocal %75 {approx = true} : vector<9x512xf32> -> vector<9x512xf32>
    %77 = arith.mulf %75, %76 : vector<9x512xf32>
    %cst_30 = arith.constant 2.000000e+00 : f32
    %78 = vector.broadcast %cst_30 : f32 to vector<9x512xf32>
    %79 = arith.subf %78, %77 : vector<9x512xf32>
    %80 = arith.mulf %76, %79 : vector<9x512xf32>
    %cst_31 = arith.constant 0.747855603 : f32
    %81 = vector.broadcast %cst_31 : f32 to vector<9x512xf32>
    %82 = arith.mulf %81, %80 : vector<9x512xf32>
    %cst_32 = arith.constant -9.587980e-02 : f32
    %83 = vector.broadcast %cst_32 : f32 to vector<9x512xf32>
    %84 = arith.addf %82, %83 : vector<9x512xf32>
    %85 = arith.mulf %84, %80 : vector<9x512xf32>
    %cst_33 = arith.constant 0.348024189 : f32
    %86 = vector.broadcast %cst_33 : f32 to vector<9x512xf32>
    %87 = arith.addf %85, %86 : vector<9x512xf32>
    %88 = arith.mulf %87, %80 : vector<9x512xf32>
    %cst_34 = arith.constant 5.000000e-01 : f32
    %89 = vector.broadcast %cst_34 : f32 to vector<9x512xf32>
    %90 = arith.mulf %89, %88 : vector<9x512xf32>
    %91 = arith.mulf %68, %68 : vector<9x512xf32>
    %cst_35 = arith.constant -5.000000e-01 : f32
    %92 = vector.broadcast %cst_35 : f32 to vector<9x512xf32>
    %93 = arith.mulf %92, %91 : vector<9x512xf32>
    %94 = math.exp %93 : vector<9x512xf32>
    %95 = arith.mulf %90, %94 : vector<9x512xf32>
    %cst_36 = arith.constant 0.000000e+00 : f32
    %96 = vector.broadcast %cst_36 : f32 to vector<9x512xf32>
    %97 = arith.cmpf oge, %68, %96 : vector<9x512xf32>
    %cst_37 = arith.constant 1.000000e+00 : f32
    %98 = vector.broadcast %cst_37 : f32 to vector<9x512xf32>
    %99 = arith.subf %98, %95 : vector<9x512xf32>
    %100 = arith.select %97, %99, %95 : vector<9x512xi1>, vector<9x512xf32>
    %101 = arith.mulf %68, %100 : vector<9x512xf32>
    %102 = vector.broadcast %65 : vector<1x512xf32> to vector<9x512xf32>
    %103 = arith.mulf %102, %44 : vector<9x512xf32>
    %104 = arith.addf %45, %103 : vector<9x512xf32>
    %105 = math.absf %104 : vector<9x512xf32>
    %cst_38 = arith.constant 0.707106769 : f32
    %106 = vector.broadcast %cst_38 : f32 to vector<9x512xf32>
    %107 = arith.mulf %105, %106 : vector<9x512xf32>
    %cst_39 = arith.constant 4.704700e-01 : f32
    %108 = vector.broadcast %cst_39 : f32 to vector<9x512xf32>
    %109 = arith.mulf %108, %107 : vector<9x512xf32>
    %cst_40 = arith.constant 1.000000e+00 : f32
    %110 = vector.broadcast %cst_40 : f32 to vector<9x512xf32>
    %111 = arith.addf %110, %109 : vector<9x512xf32>
    %112 = tpu.reciprocal %111 {approx = true} : vector<9x512xf32> -> vector<9x512xf32>
    %113 = arith.mulf %111, %112 : vector<9x512xf32>
    %cst_41 = arith.constant 2.000000e+00 : f32
    %114 = vector.broadcast %cst_41 : f32 to vector<9x512xf32>
    %115 = arith.subf %114, %113 : vector<9x512xf32>
    %116 = arith.mulf %112, %115 : vector<9x512xf32>
    %cst_42 = arith.constant 0.747855603 : f32
    %117 = vector.broadcast %cst_42 : f32 to vector<9x512xf32>
    %118 = arith.mulf %117, %116 : vector<9x512xf32>
    %cst_43 = arith.constant -9.587980e-02 : f32
    %119 = vector.broadcast %cst_43 : f32 to vector<9x512xf32>
    %120 = arith.addf %118, %119 : vector<9x512xf32>
    %121 = arith.mulf %120, %116 : vector<9x512xf32>
    %cst_44 = arith.constant 0.348024189 : f32
    %122 = vector.broadcast %cst_44 : f32 to vector<9x512xf32>
    %123 = arith.addf %121, %122 : vector<9x512xf32>
    %124 = arith.mulf %123, %116 : vector<9x512xf32>
    %cst_45 = arith.constant 5.000000e-01 : f32
    %125 = vector.broadcast %cst_45 : f32 to vector<9x512xf32>
    %126 = arith.mulf %125, %124 : vector<9x512xf32>
    %127 = arith.mulf %104, %104 : vector<9x512xf32>
    %cst_46 = arith.constant -5.000000e-01 : f32
    %128 = vector.broadcast %cst_46 : f32 to vector<9x512xf32>
    %129 = arith.mulf %128, %127 : vector<9x512xf32>
    %130 = math.exp %129 : vector<9x512xf32>
    %131 = arith.mulf %126, %130 : vector<9x512xf32>
    %cst_47 = arith.constant 0.000000e+00 : f32
    %132 = vector.broadcast %cst_47 : f32 to vector<9x512xf32>
    %133 = arith.cmpf oge, %104, %132 : vector<9x512xf32>
    %cst_48 = arith.constant 1.000000e+00 : f32
    %134 = vector.broadcast %cst_48 : f32 to vector<9x512xf32>
    %135 = arith.subf %134, %131 : vector<9x512xf32>
    %136 = arith.select %133, %135, %131 : vector<9x512xi1>, vector<9x512xf32>
    %137 = arith.mulf %104, %136 : vector<9x512xf32>
    %c0_49 = arith.constant 0 : index
    %c0_50 = arith.constant 0 : index
    %138 = vector.load %arg5[%c0_49, %c0_50] : memref<2x9xf32, #tpu.memory_space<vmem>>, vector<2x9xf32>
    %cst_51 = arith.constant dense<0.000000e+00> : vector<2x512xf32>
    %139 = tpu.matmul %138, %101, %cst_51 {dimension_numbers = #tpu.dot_dimension_numbers<[1], [0], [0], [1], [0, 0, 1, 1], [], []>} : vector<2x9xf32>, vector<9x512xf32>, vector<2x512xf32> -> vector<2x512xf32>
    %c0_52 = arith.constant 0 : index
    %c0_53 = arith.constant 0 : index
    %140 = vector.load %arg6[%c0_52, %c0_53] : memref<2x9xf32, #tpu.memory_space<vmem>>, vector<2x9xf32>
    %cst_54 = arith.constant dense<0.000000e+00> : vector<2x512xf32>
    %141 = tpu.matmul %140, %137, %cst_54 {dimension_numbers = #tpu.dot_dimension_numbers<[1], [0], [0], [1], [0, 0, 1, 1], [], []>} : vector<2x9xf32>, vector<9x512xf32>, vector<2x512xf32> -> vector<2x512xf32>
    %142 = arith.addf %139, %141 : vector<2x512xf32>
    %c0_55 = arith.constant 0 : index
    %c0_56 = arith.constant 0 : index
    %143 = vector.load %arg7[%c0_55, %c0_56] : memref<2x1xf32, #tpu.memory_space<vmem>>, vector<2x1xf32>
    %144 = vector.broadcast %143 : vector<2x1xf32> to vector<2x512xf32>
    %145 = arith.addf %142, %144 : vector<2x512xf32>
    %cst_57 = arith.constant dense<0xFF800000> : vector<512xf32>
    %146 = vector.multi_reduction <maximumf>, %145, %cst_57 [0] : vector<2x512xf32> to vector<512xf32>
    %147 = vector.shape_cast %146 : vector<512xf32> to vector<1x512xf32>
    %148 = vector.broadcast %147 : vector<1x512xf32> to vector<2x512xf32>
    %149 = arith.subf %145, %148 : vector<2x512xf32>
    %150 = math.exp %149 : vector<2x512xf32>
    %cst_58 = arith.constant dense<0.000000e+00> : vector<512xf32>
    %151 = vector.multi_reduction <add>, %150, %cst_58 [0] : vector<2x512xf32> to vector<512xf32>
    %152 = vector.shape_cast %151 : vector<512xf32> to vector<1x512xf32>
    %153 = tpu.reciprocal %152 {approx = true} : vector<1x512xf32> -> vector<1x512xf32>
    %154 = arith.mulf %152, %153 : vector<1x512xf32>
    %cst_59 = arith.constant 2.000000e+00 : f32
    %155 = vector.broadcast %cst_59 : f32 to vector<1x512xf32>
    %156 = arith.subf %155, %154 : vector<1x512xf32>
    %157 = arith.mulf %153, %156 : vector<1x512xf32>
    %158 = vector.broadcast %157 : vector<1x512xf32> to vector<2x512xf32>
    %159 = arith.mulf %150, %158 : vector<2x512xf32>
    %c0_60 = arith.constant 0 : index
    %c0_61 = arith.constant 0 : index
    %160 = vector.load %arg8[%c0_60, %c0_61] : memref<2x512xf32, #tpu.memory_space<vmem>>, vector<2x512xf32>
    tpu.vector_store %arg8[%c0_60, %c0_61], %159 {strides = array<i32>} : memref<2x512xf32, #tpu.memory_space<vmem>>, vector<2x512xf32>,
    return
  }
  func.func @transform_0(%arg0: i32) -> (i32, i32) {
    %c0_i32 = arith.constant 0 : i32
    %c0_i32_0 = arith.constant 0 : i32
    return %arg0, %c0_i32 : i32, i32
  }
  func.func @transform_1(%arg0: i32) -> (i32, i32) {
    %c0_i32 = arith.constant 0 : i32
    %c0_i32_0 = arith.constant 0 : i32
    %c0_i32_1 = arith.constant 0 : i32
    return %c0_i32, %c0_i32_0 : i32, i32
  }
  func.func @transform_2(%arg0: i32) -> (i32, i32) {
    %c0_i32 = arith.constant 0 : i32
    %c0_i32_0 = arith.constant 0 : i32
    %c0_i32_1 = arith.constant 0 : i32
    return %c0_i32, %c0_i32_0 : i32, i32
  }
  func.func @transform_3(%arg0: i32) -> (i32, i32) {
    %c0_i32 = arith.constant 0 : i32
    %c0_i32_0 = arith.constant 0 : i32
    %c0_i32_1 = arith.constant 0 : i32
    return %c0_i32, %c0_i32_0 : i32, i32
  }
  func.func @transform_4(%arg0: i32) -> (i32, i32) {
    %c0_i32 = arith.constant 0 : i32
    %c0_i32_0 = arith.constant 0 : i32
    %c0_i32_1 = arith.constant 0 : i32
    return %c0_i32, %c0_i32_0 : i32, i32
  }
  func.func @transform_5(%arg0: i32) -> (i32, i32) {
    %c0_i32 = arith.constant 0 : i32
    %c0_i32_0 = arith.constant 0 : i32
    %c0_i32_1 = arith.constant 0 : i32
    return %c0_i32, %c0_i32_0 : i32, i32
  }
  func.func @transform_6(%arg0: i32) -> (i32, i32) {
    %c0_i32 = arith.constant 0 : i32
    %c0_i32_0 = arith.constant 0 : i32
    %c0_i32_1 = arith.constant 0 : i32
    return %c0_i32, %c0_i32_0 : i32, i32
  }
  func.func @transform_7(%arg0: i32) -> (i32, i32) {
    %c0_i32 = arith.constant 0 : i32
    %c0_i32_0 = arith.constant 0 : i32
    return %c0_i32, %arg0 : i32, i32
  }
}

</mosaic_0001>

<bundles_post_ra>
// kernel: transformer_forward.1
= control target key start
LH: loop header
LB: loop body
LE: loop exit
PB: predicated region body
PF: predicated region fallthrough
CT: control target
= control target key end

     0   :  { %12 = vsyncpa [#allocation3], 0  ;;  %s3925_s0 = inlined_call_operand.vmem [shape: f32[600,82], index: 0, kind: input, shape index: {}]   ;;  %s3926_s1 = inlined_call_operand.vmem [shape: f32[24,82], index: 1, kind: input, shape index: {}]   ;;  %s3927_s2 = inlined_call_operand.vmem [shape: f32[24,1], index: 2, kind: input, shape index: {}]   ;;  %s3928_s3 = inlined_call_operand.vmem [shape: f32[24,24], index: 3, kind: input, shape index: {}]   ;;  %s3929_s4 = inlined_call_operand.vmem [shape: f32[2,9], index: 4, kind: input, shape index: {}]   ;;  %s3930_s5 = inlined_call_operand.vmem [shape: f32[2,9], index: 5, kind: input, shape index: {}]   ;;  %s3931_s6 = inlined_call_operand.vmem [shape: f32[2,1], index: 6, kind: input, shape index: {}]   ;;  %s3932_s7 = inlined_call_operand.hbm [shape: f32[2,600], index: 7, kind: output, shape index: {}]  }
   0x1   :  { %14 = vsyncpa [#allocation3 + $0x1], 0  ;;  %s2966_s24 = smov 0   ;;  %s2968_s25 = smov 0  }
   0x2   :  { %s2970_s26 = smov 0   ;;  %s2972_s27 = smov 0  }
   0x3 LB: > { %s2987_s28 = sadd.s32 4294967295, %s2919_s27   ;;  %s2356_s29 = sadd.s32 4294967294, %s2919_s27   ;;  %s2919_s27 = sphi %s2972_s27, %s3961_s27   ;;  %s2915_s26 = sphi %s2970_s26, %s3960_s26   ;;  %s2911_s25 = sphi %s2968_s25, %s3959_s25   ;;  %s2907_s24 = sphi %s2966_s24, %s3958_s24  }
   0x4   : > { %s2991_s30 = sadd.s32 1, %s2919_s27   ;;  %s179_s8 = sadd.s32 1, %s2915_s26 }
   0x5   : > { %s176_s9 = ssub.s32 %s2919_s27, %s2991_s30  ;;  %p189_p0 = scmp.ne.s32.totalorder %s2915_s26, %s2911_s25 }
   0x6   : > { %p177_p1 = scmp.eq.s32.totalorder %s176_s9, 0  ;;  %p190_p2 = scmp.eq.s32.totalorder %s2987_s28, 1 }
   0x7   : > { %p195_p3 = scmp.ne.s32.totalorder %s2911_s25, %s2907_s24  ;;  %p196_p4 = scmp.eq.s32.totalorder %s2356_s29, 1 }
   0x8   : > { %s3002_s10 = scalar_select %p177_p1, %s2915_s26, %s179_s8  }
   0x9   : > { %p3004_p5 = por %p190_p2, %p189_p0  ;;  %p3008_p6 = por %p196_p4, %p195_p3 }
   0xa   : > { %p2359_p7 = scmp.ge.s32.totalorder %s2919_s27, 1  ;;  %p249_p8 = scmp.lt.s32.totalorder %s2919_s27, 3 }
   0xc   : > { %p250_p9 = pnand %p2359_p7, %p249_p8 }
   0xd   : > { %s2361_s13 = sshll.u32 (!%p250_p9), %s2987_s28, 6  ;;  %vm389_vm0 = vcmask (!%p250_p9), 670720   ;;  %v3018_v0 = vld [vmem:[%s3926_s1] sm:$0xff] (!%p250_p9)  ;;  %v2921_v2 = vmov (!%p250_p9), 0   ;;  %v373_v3 = vld [vmem:[%s3927_s2 + $0x10] sm:$0xff] (!%p250_p9)  ;;  %v372_v4 = vld [vmem:[%s3927_s2 + $0x8] sm:$0xff] (!%p250_p9) }
   0xe   : > { %253 = sbr.rel (%p250_p9) target bundleno = 1081 (0x439), region = 48  ;;  %p290_p10 = scmp.lt.s32.totalorder (!%p250_p9), %s2361_s13, 74  ;;  %2493 = vmatprep.mubr.msk.f32.mxu0 (!%p250_p9), %vm389_vm0, %v3018_v0  ;;  %2531 = vmatprep.mubr.msk.f32.mxu1 (!%p250_p9), %vm389_vm0, %v3018_v0  ;;  %v371_v1 = vld [vmem:[%s3927_s2] sm:$0xff] (!%p250_p9)  ;;  %vm3043_vm1 = vmpackc.low (!%p250_p9), %vm389_vm0, %vm389_vm0  ;;  %vm1036_vm12 = vcmask (!%p250_p9), 195584   ;;  %vm1228_vm15 = vcmask (!%p250_p9), 1041408  }
   0xf   : > { %2711 = vset.pattern.permute.xlu0 (!%p250_p9), %v2921_v2  ;;  %2712 = vset.pattern.permute.xlu1 (!%p250_p9), %v2921_v2  ;;  %v2155_v5 = vld [vmem:[%s3931_s6] sm:$0x3] (!%p250_p9) }
  0x10   : > { %376 = vperm.xlu0 (!%p250_p9), %2711, %v371_v1   ;;  %386 = vperm.xlu1 (!%p250_p9), %2712, %v373_v3  }
  0x14   : > { %381 = vperm.xlu0 (!%p250_p9), %2711, %v372_v4   ;;  %2158 = vperm.xlu1 (!%p250_p9), %2712, %v2155_v5  }
  0x15   : > { %s3963_s13 = smov (!%p290_p10, %s2361_s13), 74  ;;  %s2452_s18 = sshll.u32 (%p3004_p5), %s2987_s28, 2 }
  0x16   : > { %s2362_s29 = sshll.u32 %s3963_s13, 3  ;;  %s282_s13 = sand.u32 1, %s2911_s25  }
  0x17   : > { %s3039_s14 = scalar_lea.vmem %s3925_s0, %s2362_s29  ;;  %s2360_s15 = sshll.u32 %s282_s13, 3 }
  0x18   : > { %v323_v7 = vld [vmem:[%s3039_s14 + $0x80] sm:$0xff]  ;;  %v324_v8 = vld [vmem:[%s3039_s14 + $0x88] sm:$0xff]  ;;  %v325_v18 = vld [vmem:[%s3039_s14 + $0x90] sm:$0xff]  ;;  %s284_s16 = scalar_lea.vmem [#allocation2], %s2360_s15  ;;  %s3871_s17 = scalar_lea.sflag [#allocation3], %s282_s13 }
  0x19   : > { %v355_v9 = vld [vmem:[%s3039_s14 + $0x180] sm:$0xff]  ;;  %v2537_v10 = vpack.c.bf16 %v324_v8, %v323_v7  ;;  %v356_v11 = vld [vmem:[%s3039_s14 + $0x188] sm:$0xff]  ;;  %v326_v20 = vld [vmem:[%s3039_s14 + $0x98] sm:$0xff]  ;;  %s2285_s19 = ssub.s32 (%p3004_p5), 5, %s2452_s18 }
  0x1a   : > { %v307_v12 = vld [vmem:[%s3039_s14] sm:$0xff]  ;;  %v308_v13 = vld [vmem:[%s3039_s14 + $0x8] sm:$0xff]  ;;  %v2585_v14 = vpack.c.bf16 %v356_v11, %v355_v9  ;;  %v357_v21 = vld [vmem:[%s3039_s14 + $0x190] sm:$0xff]  ;;  %v2543_v23 = vpack.c.bf16 %v326_v20, %v325_v18  ;;  %p2286_p11 = scmp.lt.s32.totalorder (%p3004_p5), %s2285_s19, 4 }
  0x1b   : > { %v2540_v15 = vpack.c.bf16 %v308_v13, %v307_v12  ;;  %v339_v16 = vld [vmem:[%s3039_s14 + $0x100] sm:$0xff]  ;;  %v340_v17 = vld [vmem:[%s3039_s14 + $0x108] sm:$0xff]  ;;  %2539 = vmatprep.subr.msk.bf16.mxu0 %vm3043_vm1, %v2537_v10  ;;  %v358_v22 = vld [vmem:[%s3039_s14 + $0x198] sm:$0xff] }
  0x1c   : > { %v2588_v19 = vpack.c.bf16 %v340_v17, %v339_v16  ;;  %2587 = vmatprep.subr.msk.bf16.mxu1 %vm3043_vm1, %v2585_v14  ;;  %v2591_v24 = vpack.c.bf16 %v358_v22, %v357_v21  ;;  %v309_v25 = vld [vmem:[%s3039_s14 + $0x10] sm:$0xff]  ;;  %v310_v26 = vld [vmem:[%s3039_s14 + $0x18] sm:$0xff]  ;;  %v327_v29 = vld [vmem:[%s3039_s14 + $0xa0] sm:$0xff] }
  0x1d   : > { %2542 = vmatpush3.bf16.xpose.msk.msra.mxu0 %vm3043_vm1, %v2540_v15  ;;  %v341_v27 = vld [vmem:[%s3039_s14 + $0x110] sm:$0xff]  ;;  %v342_v28 = vld [vmem:[%s3039_s14 + $0x118] sm:$0xff]  ;;  %v328_v30 = vld [vmem:[%s3039_s14 + $0xa8] sm:$0xff]  ;;  %v2546_v33 = vpack.c.bf16 %v310_v26, %v309_v25 }
  0x1e   : > { %2590 = vmatpush3.bf16.xpose.msk.msra.mxu1 %vm3043_vm1, %v2588_v19  ;;  %2545 = vmatprep.subr.msk.bf16.mxu0 %vm3043_vm1, %v2543_v23  ;;  %v359_v31 = vld [vmem:[%s3039_s14 + $0x1a0] sm:$0xff]  ;;  %v360_v32 = vld [vmem:[%s3039_s14 + $0x1a8] sm:$0xff]  ;;  %v2594_v34 = vpack.c.bf16 %v342_v28, %v341_v27  ;;  %v2549_v35 = vpack.c.bf16 %v328_v30, %v327_v29  ;;  %v329_v41 = vld [vmem:[%s3039_s14 + $0xb0] sm:$0xff] }
  0x1f   : > { %2593 = vmatprep.subr.msk.bf16.mxu1 %vm3043_vm1, %v2591_v24  ;;  %v2597_v36 = vpack.c.bf16 %v360_v32, %v359_v31  ;;  %v311_v37 = vld [vmem:[%s3039_s14 + $0x20] sm:$0xff]  ;;  %v312_v38 = vld [vmem:[%s3039_s14 + $0x28] sm:$0xff]  ;;  %v330_v42 = vld [vmem:[%s3039_s14 + $0xb8] sm:$0xff] }
  0x20   : > { %v343_v39 = vld [vmem:[%s3039_s14 + $0x120] sm:$0xff]  ;;  %v344_v40 = vld [vmem:[%s3039_s14 + $0x128] sm:$0xff]  ;;  %v361_v43 = vld [vmem:[%s3039_s14 + $0x1b0] sm:$0xff]  ;;  %v2552_v45 = vpack.c.bf16 %v312_v38, %v311_v37  ;;  %v2555_v47 = vpack.c.bf16 %v330_v42, %v329_v41 }
  0x21   : > { %v362_v44 = vld [vmem:[%s3039_s14 + $0x1b8] sm:$0xff]  ;;  %v2600_v46 = vpack.c.bf16 %v344_v40, %v343_v39  ;;  %v313_v49 = vld [vmem:[%s3039_s14 + $0x30] sm:$0xff]  ;;  %v331_v53 = vld [vmem:[%s3039_s14 + $0xc0] sm:$0xff] }
  0x22   : > { %v2603_v48 = vpack.c.bf16 %v362_v44, %v361_v43  ;;  %v314_v50 = vld [vmem:[%s3039_s14 + $0x38] sm:$0xff]  ;;  %v345_v51 = vld [vmem:[%s3039_s14 + $0x130] sm:$0xff]  ;;  %v332_v54 = vld [vmem:[%s3039_s14 + $0xc8] sm:$0xff] }
  0x23   : > { %v346_v52 = vld [vmem:[%s3039_s14 + $0x138] sm:$0xff]  ;;  %v363_v55 = vld [vmem:[%s3039_s14 + $0x1c0] sm:$0xff]  ;;  %v364_v56 = vld [vmem:[%s3039_s14 + $0x1c8] sm:$0xff]  ;;  %v2558_v57 = vpack.c.bf16 %v314_v50, %v313_v49  ;;  %v2561_v59 = vpack.c.bf16 %v332_v54, %v331_v53 }
  0x24   : > { %v2606_v58 = vpack.c.bf16 %v346_v52, %v345_v51  ;;  %v2609_v60 = vpack.c.bf16 %v364_v56, %v363_v55  ;;  %v315_v61 = vld [vmem:[%s3039_s14 + $0x40] sm:$0xff]  ;;  %v316_v62 = vld [vmem:[%s3039_s14 + $0x48] sm:$0xff]  ;;  %v333_v2 = vld [vmem:[%s3039_s14 + $0xd0] sm:$0xff] }
  0x25   : > { %2548 = vmatpush3.bf16.xpose.msk.msra.mxu0 %vm3043_vm1, %v2546_v33  ;;  %v347_v63 = vld [vmem:[%s3039_s14 + $0x140] sm:$0xff]  ;;  %v348_v1 = vld [vmem:[%s3039_s14 + $0x148] sm:$0xff]  ;;  %v334_v3 = vld [vmem:[%s3039_s14 + $0xd8] sm:$0xff]  ;;  %v2564_v7 = vpack.c.bf16 %v316_v62, %v315_v61 }
  0x26   : > { %2596 = vmatpush3.bf16.xpose.msk.msra.mxu1 %vm3043_vm1, %v2594_v34  ;;  %2551 = vmatprep.subr.msk.bf16.mxu0 %vm3043_vm1, %v2549_v35  ;;  %v365_v4 = vld [vmem:[%s3039_s14 + $0x1d0] sm:$0xff]  ;;  %v366_v5 = vld [vmem:[%s3039_s14 + $0x1d8] sm:$0xff]  ;;  %v2612_v8 = vpack.c.bf16 %v348_v1, %v347_v63  ;;  %v2567_v9 = vpack.c.bf16 %v334_v3, %v333_v2  ;;  %v335_v15 = vld [vmem:[%s3039_s14 + $0xe0] sm:$0xff] }
  0x27   : > { %2599 = vmatprep.subr.msk.bf16.mxu1 %vm3043_vm1, %v2597_v36  ;;  %v2615_v10 = vpack.c.bf16 %v366_v5, %v365_v4  ;;  %v317_v11 = vld [vmem:[%s3039_s14 + $0x50] sm:$0xff]  ;;  %v318_v12 = vld [vmem:[%s3039_s14 + $0x58] sm:$0xff]  ;;  %v336_v16 = vld [vmem:[%s3039_s14 + $0xe8] sm:$0xff] }
  0x28   : > { %v349_v13 = vld [vmem:[%s3039_s14 + $0x150] sm:$0xff]  ;;  %v350_v14 = vld [vmem:[%s3039_s14 + $0x158] sm:$0xff]  ;;  %v367_v17 = vld [vmem:[%s3039_s14 + $0x1e0] sm:$0xff]  ;;  %v2570_v19 = vpack.c.bf16 %v318_v12, %v317_v11  ;;  %v2573_v21 = vpack.c.bf16 %v336_v16, %v335_v15 }
  0x29   : > { %v368_v18 = vld [vmem:[%s3039_s14 + $0x1e8] sm:$0xff]  ;;  %v2618_v20 = vpack.c.bf16 %v350_v14, %v349_v13  ;;  %v319_v23 = vld [vmem:[%s3039_s14 + $0x60] sm:$0xff]  ;;  %v337_v27 = vld [vmem:[%s3039_s14 + $0xf0] sm:$0xff] }
  0x2a   : > { %v2621_v22 = vpack.c.bf16 %v368_v18, %v367_v17  ;;  %v320_v24 = vld [vmem:[%s3039_s14 + $0x68] sm:$0xff]  ;;  %v351_v25 = vld [vmem:[%s3039_s14 + $0x160] sm:$0xff]  ;;  %v338_v28 = vld [vmem:[%s3039_s14 + $0xf8] sm:$0xff] }
  0x2b   : > { %v352_v26 = vld [vmem:[%s3039_s14 + $0x168] sm:$0xff]  ;;  %v369_v29 = vld [vmem:[%s3039_s14 + $0x1f0] sm:$0xff]  ;;  %v370_v30 = vld [vmem:[%s3039_s14 + $0x1f8] sm:$0xff]  ;;  %v2576_v31 = vpack.c.bf16 %v320_v24, %v319_v23  ;;  %v2579_v33 = vpack.c.bf16 %v338_v28, %v337_v27 }
  0x2c   : > { %v2624_v32 = vpack.c.bf16 %v352_v26, %v351_v25  ;;  %v2627_v34 = vpack.c.bf16 %v370_v30, %v369_v29  ;;  %v321_v35 = vld [vmem:[%s3039_s14 + $0x70] sm:$0xff]  ;;  %v322_v36 = vld [vmem:[%s3039_s14 + $0x78] sm:$0xff]  ;;  %v305_v41 = vld [vmem:[%s3926_s1 + $0x8] sm:$0xff] }
  0x2d   : > { %2554 = vmatpush3.bf16.xpose.msk.msra.mxu0 %vm3043_vm1, %v2552_v45  ;;  %v353_v37 = vld [vmem:[%s3039_s14 + $0x170] sm:$0xff]  ;;  %v354_v38 = vld [vmem:[%s3039_s14 + $0x178] sm:$0xff]  ;;  %v2582_v39 = vpack.c.bf16 %v322_v36, %v321_v35 }
  0x2e   : > { %2602 = vmatpush3.bf16.xpose.msk.msra.mxu1 %vm3043_vm1, %v2600_v46  ;;  %2557 = vmatprep.subr.msk.bf16.mxu0 %vm3043_vm1, %v2555_v47  ;;  %v2630_v40 = vpack.c.bf16 %v354_v38, %v353_v37  ;;  %v306_v42 = vld [vmem:[%s3926_s1 + $0x10] sm:$0xff] }
  0x2f   : > { %2605 = vmatprep.subr.msk.bf16.mxu1 %vm3043_vm1, %v2603_v48 }
  0x35   : > { %2560 = vmatpush3.bf16.xpose.msk.msra.mxu0 %vm3043_vm1, %v2558_v57 }
  0x36   : > { %2608 = vmatpush3.bf16.xpose.msk.msra.mxu1 %vm3043_vm1, %v2606_v58  ;;  %2563 = vmatprep.subr.msk.bf16.mxu0 %vm3043_vm1, %v2561_v59 }
  0x37   : > { %2611 = vmatprep.subr.msk.bf16.mxu1 %vm3043_vm1, %v2609_v60 }
  0x3d   : > { %2566 = vmatpush3.bf16.xpose.msk.msra.mxu0 %vm3043_vm1, %v2564_v7 }
  0x3e   : > { %2614 = vmatpush3.bf16.xpose.msk.msra.mxu1 %vm3043_vm1, %v2612_v8  ;;  %2569 = vmatprep.subr.msk.bf16.mxu0 %vm3043_vm1, %v2567_v9 }
  0x3f   : > { %2617 = vmatprep.subr.msk.bf16.mxu1 %vm3043_vm1, %v2615_v10 }
  0x45   : > { %2572 = vmatpush3.bf16.xpose.msk.msra.mxu0 %vm3043_vm1, %v2570_v19 }
  0x46   : > { %2620 = vmatpush3.bf16.xpose.msk.msra.mxu1 %vm3043_vm1, %v2618_v20  ;;  %2575 = vmatprep.subr.msk.bf16.mxu0 %vm3043_vm1, %v2573_v21 }
  0x47   : > { %2623 = vmatprep.subr.msk.bf16.mxu1 %vm3043_vm1, %v2621_v22 }
  0x4d   : > { %2578 = vmatpush3.bf16.xpose.msk.msra.mxu0 %vm3043_vm1, %v2576_v31 }
  0x4e   : > { %2626 = vmatpush3.bf16.xpose.msk.msra.mxu1 %vm3043_vm1, %v2624_v32  ;;  %2581 = vmatprep.subr.msk.bf16.mxu0 %vm3043_vm1, %v2579_v33 }
  0x4f   : > { %2629 = vmatprep.subr.msk.bf16.mxu1 %vm3043_vm1, %v2627_v34 }
  0x55   : > { %2584 = vmatpush3.bf16.xpose.msk.msra.mxu0 %vm3043_vm1, %v2582_v39 }
  0x56   : > { %2632 = vmatpush3.bf16.xpose.msk.msra.mxu1 %vm3043_vm1, %v2630_v40 }
  0x5c   : > { %2494 = vmatmul.mubr.msk.f32.vlgmr.msra.gmra.mrb[0].mxu0 %vm389_vm0, %v3018_v0 }
  0x5d   : > { %2532 = vmatmul.mubr.msk.f32.vlgmr.msra.gmra.mrb[0].mxu1 %vm389_vm0, %v3018_v0  ;;  %2495 = vmatprep.mubr.msk.f32.mxu0 %vm389_vm0, %v305_v41  ;;  %v3933_v0 = vmov 0.0  }
  0x5e   : > { %2533 = vmatprep.mubr.msk.f32.mxu1 %vm389_vm0, %v305_v41 }
  0x60   : > { %2496 = vmatmul.mubr.msk.f32.gmra.mrb[2].mxu0 %vm389_vm0, %v305_v41 }
  0x61   : > { %2534 = vmatmul.mubr.msk.f32.gmra.mrb[2].mxu1 %vm389_vm0, %v305_v41  ;;  %2497 = vmatprep.mubr.msk.f32.mxu0 %vm389_vm0, %v306_v42 }
  0x62   : > { %2535 = vmatprep.mubr.msk.f32.mxu1 %vm389_vm0, %v306_v42 }
  0x64   : > { %2498 = vmatmul.mubr.msk.f32.gmra.mrb[4].mxu0 %vm389_vm0, %v306_v42 }
  0x65   : > { %2536 = vmatmul.mubr.msk.f32.gmra.mrb[4].mxu1 %vm389_vm0, %v306_v42  ;;  %1110 = vmatprep.mubr.f32.mxu0 %v3933_v0  ;;  %vm1357_vm0 = vcmask 1040384  }
  0x66   : > { %1193 = vmatprep.mubr.f32.mxu1 %v3933_v0 }
  0x8f   : > { %v377_v6 = vpop.permute.xlu0 %376  ;;  %v3228_v27 = vpop.permute.xlu1 %386 }
  0x93   : > { %v382_v1 = vpop.permute.xlu0 %381 }
 0x12f   : > { %v657_v43 = vpop.f32.mrb[0].mxu0 }
 0x130   : > { %v3195_v44 = vadd.f32 %v657_v43, %v377_v6  ;;  %v740_v45 = vpop.f32.mrb[0].mxu1  ;;  %v659_v46 = vpop.f32.mrb[1].mxu0 }
 0x131   : > { %v3197_v47 = vadd.f32 %v740_v45, %v377_v6  ;;  %v3199_v48 = vadd.f32 %v659_v46, %v377_v6  ;;  %v742_v49 = vpop.f32.mrb[1].mxu1 }
 0x132   : > { %v757_v50 = vand.u32 2147483647, %v3195_v44  ;;  %v925_v55 = vmul.f32 %v3195_v44, %v3195_v44  ;;  %v3206_v56 = vadd.f32 %v742_v49, %v377_v6  ;;  %vm985_vm2 = vcmp.ge.f32.partialorder %v3195_v44, 0.0 }
 0x133   : > { %v759_v51 = vand.u32 2147483647, %v3197_v47  ;;  %v758_v52 = vand.u32 2147483647, %v3199_v48  ;;  %v663_v53 = vpop.f32.mrb[2].mxu0  ;;  %v927_v60 = vmul.f32 %v3197_v47, %v3197_v47  ;;  %v926_v2 = vmul.f32 %v3199_v48, %v3199_v48 }
 0x134   : > { %v769_v54 = vmul.f32 0.70710677, %v757_v50  ;;  %v746_v57 = vpop.f32.mrb[2].mxu1  ;;  %v665_v58 = vpop.f32.mrb[3].mxu0  ;;  %v3212_v5 = vadd.f32 %v663_v53, %v382_v1  ;;  %v937_v8 = vmul.f32 -0.5, %v925_v55  ;;  %v928_v20 = vmul.f32 %v3206_v56, %v3206_v56 }
 0x135   : > { %v771_v59 = vmul.f32 0.70710677, %v759_v51  ;;  %v770_v61 = vmul.f32 0.70710677, %v758_v52  ;;  %v748_v62 = vpop.f32.mrb[3].mxu1  ;;  %v939_v12 = vmul.f32 -0.5, %v927_v60  ;;  %v3224_v21 = vadd.f32 %v746_v57, %v382_v1 }
 0x136   : > { %v781_v63 = vmul.f32 0.47047, %v769_v54  ;;  %v760_v9 = vand.u32 2147483647, %v3206_v56  ;;  %v938_v16 = vmul.f32 -0.5, %v926_v2  ;;  %v940_v30 = vmul.f32 -0.5, %v928_v20 }
 0x137   : > { %v783_v3 = vmul.f32 0.47047, %v771_v59  ;;  %v782_v4 = vmul.f32 0.47047, %v770_v61  ;;  %v669_v10 = vpop.f32.mrb[4].mxu0  ;;  %v3230_v32 = vadd.f32 %v665_v58, %v382_v1  ;;  %v3232_v33 = vadd.f32 %v748_v62, %v382_v1 }
 0x138   : > { %v793_v7 = vadd.f32 1.0, %v781_v63  ;;  %v752_v14 = vpop.f32.mrb[4].mxu1  ;;  %v3217_v15 = vpop.f32.mrb[5].mxu0  ;;  %v772_v17 = vmul.f32 0.70710677, %v760_v9  ;;  %v3237_v36 = vadd.f32 %v669_v10, %v3228_v27  ;;  %v929_v37 = vmul.f32 %v3212_v5, %v3212_v5 }
 0x139   : > { %v795_v11 = vadd.f32 1.0, %v783_v3  ;;  %v3215_v13 = vadd.f32 1.0, %v782_v4  ;;  %v761_v18 = vand.u32 2147483647, %v3212_v5  ;;  %v3220_v19 = vpop.f32.mrb[5].mxu1  ;;  %v931_v40 = vmul.f32 %v3224_v21, %v3224_v21 }
 0x13a   : > { %2713 = vrcp.f32 %v793_v7  ;;  %v949_v22 = vmul.f32 1.442695, %v937_v8  ;;  %v784_v23 = vmul.f32 0.47047, %v772_v17  ;;  %v953_v25 = vmul.f32 1.442695, %v939_v12 }
 0x13b   : > { %2715 = vrcp.f32 %v795_v11  ;;  %v773_v24 = vmul.f32 0.70710677, %v761_v18  ;;  %v763_v26 = vand.u32 2147483647, %v3224_v21  ;;  %v951_v28 = vmul.f32 1.442695, %v938_v16 }
 0x13c   : > { %2717 = vrcp.f32 %v3215_v13  ;;  %v3234_v34 = vadd.f32 1.0, %v784_v23  ;;  %v762_v39 = vand.u32 2147483647, %v3230_v32  ;;  %v764_v41 = vand.u32 2147483647, %v3232_v33 }
 0x13d   : > { %v785_v29 = vmul.f32 0.47047, %v773_v24  ;;  %v775_v31 = vmul.f32 0.70710677, %v763_v26  ;;  %2719 = vpow2.f32 %v949_v22  ;;  %v955_v42 = vmul.f32 1.442695, %v940_v30 }
 0x13e   : > { %2721 = vpow2.f32 %v953_v25  ;;  %v774_v43 = vmul.f32 0.70710677, %v762_v39  ;;  %v930_v46 = vmul.f32 %v3230_v32, %v3230_v32  ;;  %v776_v49 = vmul.f32 0.70710677, %v764_v41 }
 0x13f   : > { %v797_v35 = vadd.f32 1.0, %v785_v29  ;;  %v787_v38 = vmul.f32 0.47047, %v775_v31  ;;  %v765_v50 = vand.u32 2147483647, %v3237_v36  ;;  %v941_v53 = vmul.f32 -0.5, %v929_v37 }
 0x140   : > { %v786_v54 = vmul.f32 0.47047, %v774_v43  ;;  %v943_v58 = vmul.f32 -0.5, %v931_v40  ;;  %v788_v59 = vmul.f32 0.47047, %v776_v49  ;;  %v932_v63 = vmul.f32 %v3232_v33, %v3232_v33 }
 0x141   : > { %2723 = vrcp.f32 %v797_v35  ;;  %v799_v6 = vadd.f32 1.0, %v787_v38  ;;  %v777_v60 = vmul.f32 0.70710677, %v765_v50  ;;  %v3252_v1 = vadd.f32 %v752_v14, %v3228_v27 }
 0x142   : > { %2725 = vpow2.f32 %v951_v28  ;;  %v798_v62 = vadd.f32 1.0, %v786_v54  ;;  %v942_v3 = vmul.f32 -0.5, %v930_v46  ;;  %v800_v4 = vadd.f32 1.0, %v788_v59 }
 0x143   : > { %2727 = vrcp.f32 %v3234_v34  ;;  %v957_v10 = vmul.f32 1.442695, %v941_v53  ;;  %v961_v16 = vmul.f32 1.442695, %v943_v58  ;;  %v944_v20 = vmul.f32 -0.5, %v932_v63 }
 0x144   : > { %v2714_v45 = vpop.eup %2713  ;;  %2729 = vrcp.f32 %v799_v6  ;;  %v959_v24 = vmul.f32 1.442695, %v942_v3  ;;  %v3269_v38 = vadd.f32 %v3217_v15, %v3228_v27  ;;  %v933_v43 = vmul.f32 %v3237_v36, %v3237_v36 }
 0x145   : > { %v2716_v51 = vpop.eup %2715  ;;  %v817_v52 = vmul.f32 %v2714_v45, %v793_v7  ;;  %v789_v7 = vmul.f32 0.47047, %v777_v60  ;;  %2731 = vrcp.f32 %v798_v62  ;;  %vm987_vm3 = vcmp.ge.f32.partialorder %v3197_v47, 0.0 }
 0x146   : > { %v2718_v55 = vpop.eup %2717  ;;  %v819_v57 = vmul.f32 %v2716_v51, %v795_v11  ;;  %2733 = vrcp.f32 %v800_v4  ;;  %vm989_vm4 = vcmp.ge.f32.partialorder %v3212_v5, 0.0  ;;  %vm991_vm5 = vcmp.ge.f32.partialorder %v3224_v21, 0.0 }
 0x147   : > { %v829_v61 = vsub.f32 2.0, %v817_v52  ;;  %v818_v9 = vmul.f32 %v2718_v55, %v3215_v13  ;;  %v3255_v11 = vpop.eup %2719  ;;  %v3257_v17 = vadd.f32 1.0, %v789_v7  ;;  %2735 = vpow2.f32 %v955_v42 }
 0x148   : > { %v831_v2 = vsub.f32 2.0, %v819_v57  ;;  %v3259_v18 = vpop.eup %2721  ;;  %v767_v13 = vand.u32 2147483647, %v3252_v1  ;;  %v963_v42 = vmul.f32 1.442695, %v944_v20  ;;  %vm986_vm6 = vcmp.ge.f32.partialorder %v3199_v48, 0.0 }
 0x149   : > { %v841_v8 = vmul.f32 %v2714_v45, %v829_v61  ;;  %2737 = vrcp.f32 %v3257_v17  ;;  %v830_v28 = vsub.f32 2.0, %v818_v9  ;;  %v766_v57 = vand.u32 2147483647, %v3269_v38 }
 0x14a   : > { %v843_v12 = vmul.f32 %v2716_v51, %v831_v2  ;;  %2739 = vpow2.f32 %v957_v10  ;;  %v779_v37 = vmul.f32 0.70710677, %v767_v13  ;;  %vm988_vm7 = vcmp.ge.f32.partialorder %v3206_v56, 0.0 }
 0x14b   : > { %v853_v14 = vmul.f32 0.7478556, %v841_v8  ;;  %v2724_v22 = vpop.eup %2723  ;;  %2741 = vpow2.f32 %v961_v16  ;;  %v3273_v50 = vmul.f32 %v2718_v55, %v830_v28  ;;  %v778_v10 = vmul.f32 0.70710677, %v766_v57 }
 0x14c   : > { %v855_v23 = vmul.f32 0.7478556, %v843_v12  ;;  %v3263_v25 = vpop.eup %2725  ;;  %v821_v29 = vmul.f32 %v2724_v22, %v797_v35  ;;  %2743 = vpow2.f32 %v959_v24  ;;  %v791_v35 = vmul.f32 0.47047, %v779_v37 }
 0x14d   : > { %v865_v26 = vadd.f32 -0.0958798, %v853_v14  ;;  %v3265_v30 = vpop.eup %2727  ;;  %2745 = vpow2.f32 %v963_v42  ;;  %vm990_vm8 = vcmp.ge.f32.partialorder %v3230_v32, 0.0  ;;  %vm992_vm9 = vcmp.ge.f32.partialorder %v3232_v33, 0.0 }
 0x14e   : > { %v867_v31 = vadd.f32 -0.0958798, %v855_v23  ;;  %v2730_v39 = vpop.eup %2729  ;;  %v833_v41 = vsub.f32 2.0, %v821_v29  ;;  %v820_v51 = vmul.f32 %v3265_v30, %v3234_v34  ;;  %v3277_v54 = vadd.f32 1.0, %v791_v35 }
 0x14f   : > { %v877_v40 = vmul.f32 %v865_v26, %v841_v8  ;;  %v823_v46 = vmul.f32 %v2730_v39, %v799_v6  ;;  %v2732_v58 = vpop.eup %2731  ;;  %v945_v6 = vmul.f32 -0.5, %v933_v43  ;;  %v3292_v29 = vmul.f32 %v3252_v1, %v3252_v1 }
 0x150   : > { %v879_v45 = vmul.f32 %v867_v31, %v843_v12  ;;  %v845_v52 = vmul.f32 %v2724_v22, %v833_v41  ;;  %v2734_v61 = vpop.eup %2733  ;;  %v822_v55 = vmul.f32 %v2732_v58, %v798_v62  ;;  %2747 = vrcp.f32 %v3277_v54 }
 0x151   : > { %v889_v49 = vadd.f32 0.3480242, %v877_v40  ;;  %v835_v53 = vsub.f32 2.0, %v823_v46  ;;  %v3281_v3 = vpop.eup %2735  ;;  %v824_v9 = vmul.f32 %v2734_v61, %v800_v4  ;;  %v934_v22 = vmul.f32 %v3269_v38, %v3269_v38 }
 0x152   : > { %v891_v15 = vadd.f32 0.3480242, %v879_v45  ;;  %v857_v60 = vmul.f32 0.7478556, %v845_v52  ;;  %v834_v20 = vsub.f32 2.0, %v822_v55  ;;  %v832_v23 = vsub.f32 2.0, %v820_v51 }
 0x153   : > { %v901_v59 = vmul.f32 %v889_v49, %v841_v8  ;;  %v847_v2 = vmul.f32 %v2730_v39, %v835_v53  ;;  %v2738_v16 = vpop.eup %2737  ;;  %v790_v31 = vmul.f32 0.47047, %v778_v10  ;;  %v836_v39 = vsub.f32 2.0, %v824_v9 }
 0x154   : > { %v903_v63 = vmul.f32 %v891_v15, %v843_v12  ;;  %v869_v7 = vadd.f32 -0.0958798, %v857_v60  ;;  %v2740_v12 = vpop.eup %2739  ;;  %v825_v13 = vmul.f32 %v2738_v16, %v3257_v17  ;;  %v965_v41 = vmul.f32 1.442695, %v945_v6 }
 0x155   : > { %v913_v34 = vmul.f32 0.5, %v901_v59  ;;  %v859_v8 = vmul.f32 0.7478556, %v847_v2  ;;  %v2742_v4 = vpop.eup %2741  ;;  %v846_v43 = vmul.f32 %v2732_v58, %v834_v20  ;;  %v802_v17 = vadd.f32 1.0, %v790_v31 }
 0x156   : > { %v915_v14 = vmul.f32 0.5, %v903_v63  ;;  %v881_v24 = vmul.f32 %v869_v7, %v845_v52  ;;  %v837_v40 = vsub.f32 2.0, %v825_v13  ;;  %v946_v45 = vmul.f32 -0.5, %v934_v22 }
 0x157   : > { %v973_v62 = vmul.f32 %v3255_v11, %v913_v34  ;;  %v871_v28 = vadd.f32 -0.0958798, %v859_v8  ;;  %v3294_v11 = vpop.eup %2743  ;;  %v3301_v49 = vadd.f32 %v3220_v19, %v3228_v27  ;;  %v3304_v15 = vmul.f32 %v3265_v30, %v832_v23 }
 0x158   : > { %v975_v26 = vmul.f32 %v3259_v18, %v915_v14  ;;  %v893_v37 = vadd.f32 0.3480242, %v881_v24  ;;  %v3297_v35 = vmul.f32 %v2738_v16, %v837_v40  ;;  %2749 = vrcp.f32 %v802_v17  ;;  %v3306_v57 = vpop.eup %2745 }
 0x159   : > { %v883_v42 = vmul.f32 %v871_v28, %v847_v2  ;;  %v997_v46 = vsub.f32 1.0, %v973_v62  ;;  %v3309_v58 = vmul.f32 %v2734_v61, %v836_v39  ;;  %2751 = vpow2.f32 %v965_v41 }
 0x15a   : > { %v905_v18 = vmul.f32 %v893_v37, %v845_v52  ;;  %v999_v51 = vsub.f32 1.0, %v975_v26  ;;  %v861_v52 = vmul.f32 0.7478556, %v3297_v35  ;;  %v2748_v60 = vpop.eup %2747  ;;  %v3312_v19 = vmul.f32 1.442695, %v946_v45 }
 0x15b   : > { %v895_v53 = vadd.f32 0.3480242, %v883_v42  ;;  %v768_v27 = vand.u32 2147483647, %v3301_v49  ;;  %v854_v30 = vmul.f32 0.7478556, %v3273_v50  ;;  %v1009_v63 = vsel %vm985_vm2, %v997_v46, %v973_v62 }
 0x15c   : > { %v917_v59 = vmul.f32 0.5, %v905_v18  ;;  %v827_v34 = vmul.f32 %v2748_v60, %v3277_v54  ;;  %v858_v7 = vmul.f32 0.7478556, %v846_v43  ;;  %v1011_v61 = vsel %vm987_vm3, %v999_v51, %v975_v26 }
 0x15d   : > { %v907_v6 = vmul.f32 %v895_v53, %v847_v2  ;;  %v780_v10 = vmul.f32 0.70710677, %v768_v27  ;;  %v866_v16 = vadd.f32 -0.0958798, %v854_v30  ;;  %v873_v14 = vadd.f32 -0.0958798, %v861_v52 }
 0x15e   : > { %v977_v55 = vmul.f32 %v2740_v12, %v917_v59  ;;  %v839_v8 = vsub.f32 2.0, %v827_v34  ;;  %v870_v20 = vadd.f32 -0.0958798, %v858_v7  ;;  %v856_v62 = vmul.f32 0.7478556, %v3304_v15 }
 0x15f   : > { %v919_v9 = vmul.f32 0.5, %v907_v6  ;;  %v792_v23 = vmul.f32 0.47047, %v780_v10  ;;  %v878_v24 = vmul.f32 %v866_v16, %v3273_v50  ;;  %v860_v26 = vmul.f32 0.7478556, %v3309_v58 }
 0x160   : > { %v1001_v2 = vsub.f32 1.0, %v977_v55  ;;  %v3325_v12 = vmul.f32 %v2748_v60, %v839_v8  ;;  %v882_v13 = vmul.f32 %v870_v20, %v846_v43  ;;  %v3329_v28 = vmul.f32 %v1009_v63, %v3195_v44 }
 0x161   : > { %v979_v22 = vmul.f32 %v2742_v4, %v919_v9  ;;  %v804_v37 = vadd.f32 1.0, %v792_v23  ;;  %v3335_v39 = vmul.f32 %v1011_v61, %v3197_v47  ;;  %v890_v41 = vadd.f32 0.3480242, %v878_v24 }
 0x162   : > { %v1013_v54 = vsel %vm989_vm4, %v1001_v2, %v977_v55  ;;  %v863_v40 = vmul.f32 0.7478556, %v3325_v12  ;;  %v894_v42 = vadd.f32 0.3480242, %v882_v13  ;;  %v2750_v45 = vpop.eup %2749  ;;  %v868_v44 = vadd.f32 -0.0958798, %v856_v62 }
 0x163   : > { %v3332_v31 = vmul.f32 %v1013_v54, %v3212_v5  ;;  %v1003_v4 = vsub.f32 1.0, %v979_v22  ;;  %2753 = vrcp.f32 %v804_v37  ;;  %v872_v18 = vadd.f32 -0.0958798, %v860_v26  ;;  %v2752_v5 = vpop.eup %2751 }
 0x164   : > { %v826_v53 = vmul.f32 %v2750_v45, %v802_v17  ;;  %v902_v47 = vmul.f32 %v890_v41, %v3273_v50  ;;  %v885_v59 = vmul.f32 %v873_v14, %v3297_v35  ;;  %v906_v52 = vmul.f32 %v894_v42, %v846_v43 }
 0x165   : > { %v1015_v46 = vsel %vm991_vm5, %v1003_v4, %v979_v22  ;;  %v880_v60 = vmul.f32 %v868_v44, %v3304_v15  ;;  %v884_v6 = vmul.f32 %v872_v18, %v3309_v58  ;;  %v2635_v27 = vpack.c.bf16 %v3332_v31, %v3329_v28 }
 0x166   : > { %v3342_v51 = vmul.f32 %v1015_v46, %v3224_v21  ;;  %v875_v30 = vadd.f32 -0.0958798, %v863_v40  ;;  %v838_v63 = vsub.f32 2.0, %v826_v53  ;;  %v914_v55 = vmul.f32 0.5, %v902_v47 }
 0x167   : > { %v947_v17 = vmul.f32 -0.5, %v3292_v29  ;;  %v918_v34 = vmul.f32 0.5, %v906_v52  ;;  %v892_v50 = vadd.f32 0.3480242, %v880_v60  ;;  %v896_v7 = vadd.f32 0.3480242, %v884_v6 }
 0x168   : > { %v2639_v21 = vpack.c.bf16 %v3342_v51, %v3335_v39  ;;  %v850_v43 = vmul.f32 %v2750_v45, %v838_v63  ;;  %v936_v61 = vmul.f32 %v3301_v49, %v3301_v49  ;;  %v974_v9 = vmul.f32 %v3263_v25, %v914_v55 }
 0x169   : > { %v897_v10 = vadd.f32 0.3480242, %v885_v59  ;;  %v978_v16 = vmul.f32 %v3294_v11, %v918_v34  ;;  %v904_v2 = vmul.f32 %v892_v50, %v3304_v15  ;;  %v908_v29 = vmul.f32 %v896_v7, %v3309_v58 }
 0x16a   : > { %2755 = vpow2.f32 %v3312_v19  ;;  %v998_v14 = vsub.f32 1.0, %v974_v9  ;;  %v862_v8 = vmul.f32 0.7478556, %v850_v43  ;;  %v887_v25 = vmul.f32 %v875_v30, %v3325_v12 }
 0x16b   : > { %v909_v20 = vmul.f32 %v897_v10, %v3297_v35  ;;  %v1002_v22 = vsub.f32 1.0, %v978_v16  ;;  %v916_v23 = vmul.f32 0.5, %v904_v2  ;;  %v920_v24 = vmul.f32 0.5, %v908_v29 }
 0x16c   : > { %v969_v62 = vmul.f32 1.442695, %v947_v17  ;;  %v948_v54 = vmul.f32 -0.5, %v936_v61  ;;  %v1010_v11 = vsel %vm986_vm6, %v998_v14, %v974_v9  ;;  %v874_v13 = vadd.f32 -0.0958798, %v862_v8  ;;  %v1035_v8 = vld [vmem:[%s3928_s3 + $0x10] sm:$0xff] }
 0x16d   : > { %v2754_v15 = vpop.eup %2753  ;;  %v1014_v58 = vsel %vm990_vm8, %v1002_v22, %v978_v16  ;;  %v976_v19 = vmul.f32 %v3281_v3, %v916_v23  ;;  %v980_v26 = vmul.f32 %v3306_v57, %v920_v24  ;;  %v921_v35 = vmul.f32 0.5, %v909_v20 }
 0x16e   : > { %v828_v28 = vmul.f32 %v2754_v15, %v804_v37  ;;  %v1022_v31 = vmul.f32 %v1010_v11, %v3199_v48  ;;  %v1026_v4 = vmul.f32 %v1014_v58, %v3230_v32  ;;  %v886_v39 = vmul.f32 %v874_v13, %v850_v43 }
 0x16f   : > { %v1000_v40 = vsub.f32 1.0, %v976_v19  ;;  %v1004_v41 = vsub.f32 1.0, %v980_v26  ;;  %v899_v42 = vadd.f32 0.3480242, %v887_v25  ;;  %2757 = vpow2.f32 %v969_v62 }
 0x170   : > { %v840_v45 = vsub.f32 2.0, %v828_v28  ;;  %v2633_v46 = vpack.c.bf16 %v1026_v4, %v1022_v31  ;;  %v898_v44 = vadd.f32 0.3480242, %v886_v39  ;;  %v971_v18 = vmul.f32 1.442695, %v948_v54 }
 0x171   : > { %v1012_v3 = vsel %vm988_vm7, %v1000_v40, %v976_v19  ;;  %v1016_v57 = vsel %vm992_vm9, %v1004_v41, %v980_v26  ;;  %v981_v37 = vmul.f32 %v2752_v5, %v921_v35  ;;  %v911_v47 = vmul.f32 %v899_v42, %v3325_v12 }
 0x172   : > { %v852_v51 = vmul.f32 %v2754_v15, %v840_v45  ;;  %2634 = vmatprep.subr.bf16.mxu0 %v2633_v46  ;;  %v1024_v48 = vmul.f32 %v1012_v3, %v3206_v56  ;;  %v1028_v32 = vmul.f32 %v1016_v57, %v3232_v33  ;;  %v910_v53 = vmul.f32 %v898_v44, %v850_v43 }
 0x173   : > { %2636 = vmatpush1.bf16.msra.mxu0 %v2635_v27  ;;  %2759 = vpow2.f32 %v971_v18  ;;  %v1005_v30 = vsub.f32 1.0, %v981_v37  ;;  %v923_v5 = vmul.f32 0.5, %v911_v47  ;;  %vm993_vm10 = vcmp.ge.f32.partialorder %v3237_v36, 0.0 }
 0x174   : > { %v2756_v59 = vpop.eup %2755  ;;  %v2637_v52 = vpack.c.bf16 %v1028_v32, %v1024_v48  ;;  %v922_v60 = vmul.f32 0.5, %v910_v53  ;;  %v864_v6 = vmul.f32 0.7478556, %v852_v51  ;;  %vm994_vm11 = vcmp.ge.f32.partialorder %v3269_v38, 0.0 }
 0x175   : > { %v1017_v33 = vsel %vm993_vm10, %v1005_v30, %v981_v37  ;;  %vm995_vm13 = vcmp.ge.f32.partialorder %v3252_v1, 0.0  ;;  %vm996_vm14 = vcmp.ge.f32.partialorder %v3301_v49, 0.0 }
 0x176   : > { %2638 = vmatprep.subr.bf16.mxu1 %v2637_v52  ;;  %v982_v63 = vmul.f32 %v2756_v59, %v922_v60  ;;  %v876_v55 = vadd.f32 -0.0958798, %v864_v6  ;;  %v1029_v61 = vmul.f32 %v1017_v33, %v3237_v36 }
 0x177   : > { %2640 = vmatpush1.bf16.msra.mxu1 %v2639_v21  ;;  %v1033_v21 = vld [vmem:[%s3928_s3] sm:$0xff] }
 0x178   : > { %v1006_v56 = vsub.f32 1.0, %v982_v63  ;;  %v888_v17 = vmul.f32 %v876_v55, %v852_v51 }
 0x179   : > { %v2758_v27 = vpop.eup %2757 }
 0x17a   : > { %v1018_v12 = vsel %vm994_vm11, %v1006_v56, %v982_v63  ;;  %v900_v34 = vadd.f32 0.3480242, %v888_v17  ;;  %v983_v7 = vmul.f32 %v2758_v27, %v923_v5 }
 0x17b   : > { %v1030_v50 = vmul.f32 %v1018_v12, %v3269_v38  ;;  %v1034_v38 = vld [vmem:[%s3928_s3 + $0x8] sm:$0xff] }
 0x17c   : > { %v912_v43 = vmul.f32 %v900_v34, %v852_v51  ;;  %v1007_v16 = vsub.f32 1.0, %v983_v7 }
 0x17d   : > { %1050 = vmatprep.subr.mxu0 %v1030_v50  ;;  %v2760_v10 = vpop.eup %2759 }
 0x17e   : > { %v924_v9 = vmul.f32 0.5, %v912_v43  ;;  %1051 = vmatpush1.msra.mxu0 %v1029_v61  ;;  %v1019_v29 = vsel %vm995_vm13, %v1007_v16, %v983_v7 }
 0x17f   : > { %2433 = vmatmul.mubr.msk.f32.vlgmr.msra.gmra.mrb[6].mxu0 %vm1036_vm12, %v1033_v21  ;;  %v1031_v22 = vmul.f32 %v1019_v29, %v3252_v1 }
 0x180   : > { %v984_v2 = vmul.f32 %v2760_v10, %v924_v9  ;;  %1116 = vmatprep.mubr.f32.mxu0 %v3933_v0 }
 0x182   : > { %v1008_v36 = vsub.f32 1.0, %v984_v2 }
 0x183   : > { %2434 = vmatmul.mubr.msk.f32.gmra.mrb[8].mxu0 %vm1036_vm12, %v1034_v38 }
 0x184   : > { %v1020_v14 = vsel %vm996_vm14, %v1008_v36, %v984_v2  ;;  %1122 = vmatprep.mubr.f32.mxu0 %v3933_v0 }
 0x185   : > { %v1032_v20 = vmul.f32 %v1020_v14, %v3301_v49 }
 0x187   : > { %1133 = vmatprep.subr.mxu1 %v1032_v20  ;;  %2435 = vmatmul.mubr.msk.f32.gmra.mrb[10].mxu0 %vm1036_vm12, %v1035_v8 }
 0x188   : > { %1134 = vmatpush1.msra.mxu1 %v1031_v22  ;;  %1900 = vmatprep.mubr.f32.mxu0 %v3933_v0 }
 0x189   : > { %2436 = vmatmul.mubr.msk.f32.vlgmr.msra.gmra.mrb[6].mxu1 %vm1036_vm12, %v1033_v21 }
 0x18a   : > { %1199 = vmatprep.mubr.f32.mxu1 %v3933_v0 }
 0x18d   : > { %2437 = vmatmul.mubr.msk.f32.gmra.mrb[8].mxu1 %vm1036_vm12, %v1034_v38 }
 0x18e   : > { %1205 = vmatprep.mubr.f32.mxu1 %v3933_v0 }
 0x191   : > { %2438 = vmatmul.mubr.msk.f32.gmra.mrb[10].mxu1 %vm1036_vm12, %v1035_v8 }
 0x192   : > { %1971 = vmatprep.mubr.f32.mxu1 %v3933_v0 }
 0x252   : > { %v3407_v49 = vpop.f32.mrb[6].mxu0 }
 0x253   : > { %v1216_v1 = vrot.slane %v3407_v49, 4  ;;  %v1257_v23 = vrot.slane %v3407_v49, 2  ;;  %v3411_v24 = vpop.f32.mrb[7].mxu0 }
 0x254   : > { %v1217_v25 = vrot.slane %v3411_v24, 4  ;;  %v1258_v62 = vrot.slane %v3411_v24, 2 }
 0x255   : > { %v1224_v54 = vmul.f32 %v1216_v1, %v3407_v49  ;;  %v1265_v11 = vmul.f32 %v1257_v23, %v3407_v49 }
 0x256   : > { %v1225_v13 = vmul.f32 %v1217_v25, %v3411_v24  ;;  %v1266_v15 = vmul.f32 %v1258_v62, %v3411_v24  ;;  %v3419_v58 = vpop.f32.mrb[8].mxu0 }
 0x257   : > { %v1229_v19 = vsel %vm1228_vm15, %v1224_v54, 0.0  ;;  %v1273_v26 = vrot.slane %v1265_v11, 2  ;;  %v3422_v35 = vpop.f32.mrb[9].mxu0 }
 0x258   : > { %v1230_v28 = vrot.slane %v1229_v19, 4  ;;  %v1236_v31 = vsel %vm1228_vm15, %v1225_v13, 0.0  ;;  %v1274_v4 = vrot.slane %v1266_v15, 2 }
 0x259   : > { %v1281_v39 = vsel %vm1228_vm15, %v1273_v26, 0.0  ;;  %v1237_v40 = vrot.slane %v1236_v31, 4 }
 0x25a   : > { %v1231_v41 = vadd.f32 %v1230_v28, %v1229_v19  ;;  %v1282_v42 = vrot.slane %v1281_v39, 4  ;;  %v1288_v45 = vsel %vm1228_vm15, %v1274_v4, 0.0  ;;  %v3427_v46 = vpop.f32.mrb[10].mxu0 }
 0x25b   : > { %v1238_v44 = vadd.f32 %v1237_v40, %v1236_v31  ;;  %v1289_v18 = vrot.slane %v1288_v45, 4  ;;  %v3429_v3 = vpop.f32.mrb[11].mxu0 }
 0x25c   : > { %v1283_v57 = vadd.f32 %v1282_v42, %v1281_v39  ;;  %v3431_v37 = vpop.f32.mrb[6].mxu1  ;;  %v1232_v51 = vrot.slane %v1231_v41, 2 }
 0x25d   : > { %v1218_v48 = vrot.slane %v3431_v37, 4  ;;  %v1259_v32 = vrot.slane %v3431_v37, 2  ;;  %v1290_v53 = vadd.f32 %v1289_v18, %v1288_v45  ;;  %v3435_v47 = vpop.f32.mrb[7].mxu1  ;;  %v1239_v59 = vrot.slane %v1238_v44, 2 }
 0x25e   : > { %v1219_v52 = vrot.slane %v3435_v47, 4  ;;  %v1260_v60 = vrot.slane %v3435_v47, 2  ;;  %v1233_v6 = vadd.f32 %v1232_v51, %v1231_v41  ;;  %v1284_v30 = vrot.slane %v1283_v57, 2 }
 0x25f   : > { %v1226_v63 = vmul.f32 %v1218_v48, %v3431_v37  ;;  %v1267_v55 = vmul.f32 %v1259_v32, %v3431_v37  ;;  %v1240_v5 = vadd.f32 %v1239_v59, %v1238_v44  ;;  %v1291_v56 = vrot.slane %v1290_v53, 2 }
 0x260   : > { %v1227_v17 = vmul.f32 %v1219_v52, %v3435_v47  ;;  %v1268_v33 = vmul.f32 %v1260_v60, %v3435_v47  ;;  %v1234_v27 = vrot.slane %v1233_v6, 1  ;;  %v1285_v12 = vadd.f32 %v1284_v30, %v1283_v57  ;;  %v3443_v34 = vpop.f32.mrb[8].mxu1 }
 0x261   : > { %v1243_v50 = vsel %vm1228_vm15, %v1226_v63, 0.0  ;;  %v1275_v7 = vrot.slane %v1267_v55, 2  ;;  %v1241_v43 = vrot.slane %v1240_v5, 1  ;;  %v1292_v61 = vadd.f32 %v1291_v56, %v1290_v53  ;;  %v3446_v21 = vpop.f32.mrb[9].mxu1 }
 0x262   : > { %v1244_v9 = vrot.slane %v1243_v50, 4  ;;  %v1250_v10 = vsel %vm1228_vm15, %v1227_v17, 0.0  ;;  %v1276_v16 = vrot.slane %v1268_v33, 2  ;;  %v1235_v2 = vadd.f32 %v1234_v27, %v1233_v6 }
 0x263   : > { %v1295_v38 = vsel %vm1228_vm15, %v1275_v7, 0.0  ;;  %v1251_v36 = vrot.slane %v1250_v10, 4  ;;  %v1286_v29 = vrot.slane %v1285_v12, 1  ;;  %v1242_v14 = vadd.f32 %v1241_v43, %v1240_v5 }
 0x264   : > { %v1245_v8 = vadd.f32 %v1244_v9, %v1243_v50  ;;  %v1296_v20 = vrot.slane %v1295_v38, 4  ;;  %v1302_v22 = vsel %vm1228_vm15, %v1276_v16, 0.0  ;;  %v1309_v1 = vmul.f32 0.5, %v1235_v2  ;;  %v3451_v23 = vpop.f32.mrb[10].mxu1 }
 0x265   : > { %v1252_v25 = vadd.f32 %v1251_v36, %v1250_v10  ;;  %v1303_v62 = vrot.slane %v1302_v22, 4  ;;  %v1287_v54 = vadd.f32 %v1286_v29, %v1285_v12  ;;  %v1293_v11 = vrot.slane %v1292_v61, 1  ;;  %v3453_v13 = vpop.f32.mrb[11].mxu1 }
 0x266   : > { %v1297_v15 = vadd.f32 %v1296_v20, %v1295_v38  ;;  %2761 = vtanh.f32 %v1309_v1  ;;  %v1246_v19 = vrot.slane %v1245_v8, 2  ;;  %v1310_v26 = vmul.f32 0.5, %v1242_v14 }
 0x267   : > { %v1304_v28 = vadd.f32 %v1303_v62, %v1302_v22  ;;  %v1325_v31 = vmul.f32 0.5, %v1287_v54  ;;  %v1294_v4 = vadd.f32 %v1293_v11, %v1292_v61  ;;  %v1253_v42 = vrot.slane %v1252_v25, 2 }
 0x268   : > { %v1247_v39 = vadd.f32 %v1246_v19, %v1245_v8  ;;  %v1298_v40 = vrot.slane %v1297_v15, 2  ;;  %2763 = vtanh.f32 %v1310_v26 }
 0x269   : > { %2765 = vtanh.f32 %v1325_v31  ;;  %v1326_v41 = vmul.f32 0.5, %v1294_v4  ;;  %v1305_v18 = vrot.slane %v1304_v28, 2  ;;  %v1254_v48 = vadd.f32 %v1253_v42, %v1252_v25 }
 0x26a   : > { %v1248_v45 = vrot.slane %v1247_v39, 1  ;;  %v1299_v44 = vadd.f32 %v1298_v40, %v1297_v15 }
 0x26b   : > { %2767 = vtanh.f32 %v1326_v41  ;;  %v1306_v59 = vadd.f32 %v1305_v18, %v1304_v28  ;;  %v1255_v30 = vrot.slane %v1254_v48, 1 }
 0x26c   : > { %v1249_v57 = vadd.f32 %v1248_v45, %v1247_v39  ;;  %v1300_v51 = vrot.slane %v1299_v44, 1 }
 0x26d   : > { %v1307_v55 = vrot.slane %v1306_v59, 1  ;;  %v1256_v43 = vadd.f32 %v1255_v30, %v1254_v48 }
 0x26e   : > { %v1301_v32 = vadd.f32 %v1300_v51, %v1299_v44  ;;  %v1311_v53 = vmul.f32 0.5, %v1249_v57 }
 0x26f   : > { %v1308_v10 = vadd.f32 %v1307_v55, %v1306_v59  ;;  %v1312_v1 = vmul.f32 0.5, %v1256_v43 }
 0x270   : > { %v2762_v52 = vpop.eup %2761  ;;  %2769 = vtanh.f32 %v1311_v53  ;;  %v1327_v60 = vmul.f32 0.5, %v1301_v32 }
 0x271   : > { %v1317_v6 = vmul.f32 0.5, %v2762_v52 }
 0x272   : > { %v2764_v63 = vpop.eup %2763  ;;  %2771 = vtanh.f32 %v1327_v60 }
 0x273   : > { %v2766_v5 = vpop.eup %2765  ;;  %v1321_v56 = vadd.f32 0.5, %v1317_v6  ;;  %v1318_v17 = vmul.f32 0.5, %v2764_v63  ;;  %2773 = vtanh.f32 %v1312_v1 }
 0x274   : > { %v1333_v33 = vmul.f32 0.5, %v2766_v5 }
 0x275   : > { %v2768_v27 = vpop.eup %2767  ;;  %v1341_v12 = vmul.f32 %v1321_v56, %v3407_v49  ;;  %v1345_v50 = vmul.f32 %v1321_v56, %v3419_v58  ;;  %v1322_v7 = vadd.f32 0.5, %v1318_v17 }
 0x276   : > { %v1337_v61 = vadd.f32 0.5, %v1333_v33  ;;  %v1334_v9 = vmul.f32 0.5, %v2768_v27 }
 0x277   : > { %v1358_v16 = vrot.slane %v1341_v12, 7  ;;  %v1362_v2 = vrot.slane %v1345_v50, 7  ;;  %v3458_v38 = vmul.f32 %v1322_v7, %v3411_v24  ;;  %v3461_v36 = vmul.f32 %v1322_v7, %v3422_v35 }
 0x278   : > { %v3464_v29 = vmul.f32 %v1337_v61, %v3407_v49  ;;  %v3467_v14 = vmul.f32 %v1337_v61, %v3419_v58  ;;  %v1338_v8 = vadd.f32 0.5, %v1334_v9  ;;  %v1328_v49 = vmul.f32 0.5, %v1308_v10 }
 0x279   : > { %v3470_v20 = vadd.f32 %v1358_v16, %v3419_v58  ;;  %v3938_v22 = vrot.slane %v3458_v38, 7  ;;  %v1363_v25 = vsel %vm1357_vm0, %v1358_v16, %v1362_v2 }
 0x27a   : > { %v2770_v62 = vpop.eup %2769  ;;  %v1586_v54 = vrot.slane %v3464_v29, 7  ;;  %v3476_v11 = vmul.f32 %v1338_v8, %v3422_v35  ;;  %2775 = vtanh.f32 %v1328_v49  ;;  %v3500_v32 = vmul.f32 %v1338_v8, %v3411_v24 }
 0x27b   : > { %v1386_v15 = vand.u32 2147483647, %v3470_v20  ;;  %v1319_v19 = vmul.f32 0.5, %v2770_v62  ;;  %v3487_v31 = vadd.f32 %v3938_v22, %v3422_v35  ;;  %v1498_v44 = vmul.f32 %v3470_v20, %v3470_v20 }
 0x27c   : > { %v2772_v26 = vpop.eup %2771  ;;  %v3482_v28 = vadd.f32 %v1586_v54, %v3419_v58  ;;  %v3937_v56 = vrot.slane %v3500_v32, 7  ;;  %v3534_v2 = vadd.f32 %v1363_v25, %v3427_v46  ;;  %v1590_v8 = vrot.slane %v3467_v14, 7 }
 0x27d   : > { %v1394_v4 = vmul.f32 0.70710677, %v1386_v15  ;;  %v1323_v39 = vadd.f32 0.5, %v1319_v19  ;;  %v1335_v40 = vmul.f32 0.5, %v2772_v26  ;;  %v1387_v42 = vand.u32 2147483647, %v3487_v31  ;;  %v2774_v27 = vpop.eup %2773 }
 0x27e   : > { %v1614_v41 = vand.u32 2147483647, %v3482_v28  ;;  %v1506_v30 = vmul.f32 -0.5, %v1498_v44  ;;  %v1726_v33 = vmul.f32 %v3482_v28, %v3482_v28  ;;  %v3530_v9 = vadd.f32 %v3937_v56, %v3422_v35 }
 0x27f   : > { %v1402_v45 = vmul.f32 0.47047, %v1394_v4  ;;  %v1339_v58 = vadd.f32 0.5, %v1335_v40  ;;  %v3494_v18 = vmul.f32 %v1323_v39, %v3431_v37  ;;  %v3497_v51 = vmul.f32 %v1323_v39, %v3443_v34 }
 0x280   : > { %v1622_v57 = vmul.f32 0.70710677, %v1614_v41  ;;  %v1395_v48 = vmul.f32 0.70710677, %v1387_v42  ;;  %v1514_v12 = vmul.f32 1.442695, %v1506_v30  ;;  %v1499_v62 = vmul.f32 %v3487_v31, %v3487_v31 }
 0x281   : > { %v1410_v53 = vadd.f32 1.0, %v1402_v45  ;;  %v3940_v59 = vrot.slane %v3494_v18, 7  ;;  %v3504_v52 = vmul.f32 %v1339_v58, %v3431_v37  ;;  %v3507_v6 = vmul.f32 %v1339_v58, %v3443_v34 }
 0x282   : > { %v1630_v60 = vmul.f32 0.47047, %v1622_v57  ;;  %v1403_v5 = vmul.f32 0.47047, %v1395_v48  ;;  %v1734_v1 = vmul.f32 -0.5, %v1726_v33  ;;  %v1320_v4 = vmul.f32 0.5, %v2774_v27 }
 0x283   : > { %2777 = vrcp.f32 %v1410_v53  ;;  %v3512_v63 = vadd.f32 %v3940_v59, %v3443_v34  ;;  %v3939_v24 = vrot.slane %v3504_v52, 7  ;;  %v1615_v49 = vand.u32 2147483647, %v3530_v9 }
 0x284   : > { %v1638_v55 = vadd.f32 1.0, %v1630_v60  ;;  %v2776_v43 = vpop.eup %2775  ;;  %v3525_v61 = vadd.f32 1.0, %v1403_v5  ;;  %v1390_v42 = vand.u32 2147483647, %v3534_v2  ;;  %v1742_v44 = vmul.f32 1.442695, %v1734_v1 }
 0x285   : > { %v1388_v37 = vand.u32 2147483647, %v3512_v63  ;;  %v3520_v17 = vadd.f32 %v3939_v24, %v3443_v34  ;;  %v1500_v26 = vmul.f32 %v3512_v63, %v3512_v63  ;;  %v1623_v25 = vmul.f32 0.70710677, %v1615_v49 }
 0x286   : > { %2779 = vrcp.f32 %v1638_v55  ;;  %v1336_v41 = vmul.f32 0.5, %v2776_v43  ;;  %v1507_v58 = vmul.f32 -0.5, %v1499_v62  ;;  %v1324_v48 = vadd.f32 0.5, %v1320_v4 }
 0x287   : > { %v1396_v50 = vmul.f32 0.70710677, %v1388_v37  ;;  %v1616_v7 = vand.u32 2147483647, %v3520_v17  ;;  %2781 = vpow2.f32 %v1514_v12  ;;  %v1631_v57 = vmul.f32 0.47047, %v1623_v25 }
 0x288   : > { %2783 = vrcp.f32 %v3525_v61  ;;  %v1340_v60 = vadd.f32 0.5, %v1336_v41  ;;  %v1398_v30 = vmul.f32 0.70710677, %v1390_v42  ;;  %v1508_v33 = vmul.f32 -0.5, %v1500_v26 }
 0x289   : > { %v1404_v10 = vmul.f32 0.47047, %v1396_v50  ;;  %v1624_v34 = vmul.f32 0.70710677, %v1616_v7  ;;  %v1728_v27 = vmul.f32 %v3520_v17, %v3520_v17  ;;  %v3547_v12 = vadd.f32 1.0, %v1631_v57 }
 0x28a   : > { %v3550_v7 = vmul.f32 %v1324_v48, %v3435_v47  ;;  %v3556_v43 = vmul.f32 %v1340_v60, %v3435_v47  ;;  %v1406_v1 = vmul.f32 0.47047, %v1398_v30  ;;  %v1516_v25 = vmul.f32 1.442695, %v1507_v58 }
 0x28b   : > { %v1412_v15 = vadd.f32 1.0, %v1404_v10  ;;  %v1632_v19 = vmul.f32 0.47047, %v1624_v34  ;;  %v3560_v34 = vmul.f32 %v1340_v60, %v3446_v21  ;;  %v1518_v42 = vmul.f32 1.442695, %v1508_v33 }
 0x28c   : > { %v3935_v47 = vrot.slane %v3556_v43, 7  ;;  %v3567_v4 = vadd.f32 1.0, %v1406_v1  ;;  %v1736_v60 = vmul.f32 -0.5, %v1728_v27  ;;  %v1502_v59 = vmul.f32 %v3534_v2, %v3534_v2 }
 0x28d   : > { %v2778_v39 = vpop.eup %2777  ;;  %2785 = vrcp.f32 %v1412_v15  ;;  %v1640_v40 = vadd.f32 1.0, %v1632_v19  ;;  %v3936_v19 = vrot.slane %v3550_v7, 7  ;;  %vm1538_vm1 = vcmp.ge.f32.partialorder %v3470_v20, 0.0 }
 0x28e   : > { %v1426_v45 = vmul.f32 %v2778_v39, %v1410_v53  ;;  %v3553_v53 = vmul.f32 %v1324_v48, %v3446_v21  ;;  %v3577_v58 = vadd.f32 %v3935_v47, %v3446_v21  ;;  %v1746_v35 = vmul.f32 1.442695, %v1736_v60 }
 0x28f   : > { %2787 = vrcp.f32 %v1640_v40  ;;  %vm1766_vm2 = vcmp.ge.f32.partialorder %v3482_v28, 0.0  ;;  %vm1540_vm3 = vcmp.ge.f32.partialorder %v3512_v63, 0.0  ;;  %v3946_v14 = vrot.slane %v3494_v18, 7 }
 0x290   : > { %v2780_v5 = vpop.eup %2779  ;;  %v1434_v37 = vsub.f32 2.0, %v1426_v45  ;;  %2789 = vrcp.f32 %v3547_v12  ;;  %v3572_v45 = vadd.f32 %v3936_v19, %v3446_v21  ;;  %vm1768_vm4 = vcmp.ge.f32.partialorder %v3520_v17, 0.0 }
 0x291   : > { %v1654_v50 = vmul.f32 %v2780_v5, %v1638_v55  ;;  %v1727_v55 = vmul.f32 %v3530_v9, %v3530_v9  ;;  %2791 = vpow2.f32 %v1742_v44  ;;  %vm1542_vm5 = vcmp.ge.f32.partialorder %v3534_v2, 0.0 }
 0x292   : > { %v1442_v10 = vmul.f32 %v2778_v39, %v1434_v37  ;;  %v2782_v39 = vpop.eup %2781  ;;  %2793 = vrcp.f32 %v3567_v4  ;;  %v1389_v33 = vand.u32 2147483647, %v3572_v45  ;;  %vm1767_vm7 = vcmp.ge.f32.partialorder %v3530_v9, 0.0 }
 0x293   : > { %v1662_v62 = vsub.f32 2.0, %v1654_v50  ;;  %v2784_v57 = vpop.eup %2783  ;;  %2795 = vpow2.f32 %v1516_v25  ;;  %vm1539_vm9 = vcmp.ge.f32.partialorder %v3487_v31, 0.0  ;;  %vm1541_vm13 = vcmp.ge.f32.partialorder %v3572_v45, 0.0 }
 0x294   : > { %v1450_v26 = vmul.f32 0.7478556, %v1442_v10  ;;  %2797 = vpow2.f32 %v1518_v42  ;;  %v1427_v21 = vmul.f32 %v2784_v57, %v3525_v61  ;;  %v1397_v0 = vmul.f32 0.70710677, %v1389_v33 }
 0x295   : > { %v1670_v41 = vmul.f32 %v2780_v5, %v1662_v62  ;;  %v1735_v5 = vmul.f32 -0.5, %v1727_v55  ;;  %v1617_v62 = vand.u32 2147483647, %v3577_v58  ;;  %vm1769_vm14 = vcmp.ge.f32.partialorder %v3577_v58, 0.0 }
 0x296   : > { %v1458_v48 = vadd.f32 -0.0958798, %v1450_v26  ;;  %v1405_v55 = vmul.f32 0.47047, %v1397_v0  ;;  %v1435_v42 = vsub.f32 2.0, %v1427_v21 }
 0x297   : > { %v2786_v30 = vpop.eup %2785  ;;  %v1678_v37 = vmul.f32 0.7478556, %v1670_v41  ;;  %v1744_v16 = vmul.f32 1.442695, %v1735_v5  ;;  %v1625_v24 = vmul.f32 0.70710677, %v1617_v62 }
 0x298   : > { %v1466_v50 = vmul.f32 %v1458_v48, %v1442_v10  ;;  %v1428_v1 = vmul.f32 %v2786_v30, %v1412_v15  ;;  %v1413_v49 = vadd.f32 1.0, %v1405_v55 }
 0x299   : > { %v2788_v27 = vpop.eup %2787  ;;  %v1686_v26 = vadd.f32 -0.0958798, %v1678_v37  ;;  %v1633_v61 = vmul.f32 0.47047, %v1625_v24  ;;  %v1729_v24 = vmul.f32 %v3577_v58, %v3577_v58 }
 0x29a   : > { %v1474_v47 = vadd.f32 0.3480242, %v1466_v50  ;;  %v1436_v19 = vsub.f32 2.0, %v1428_v1  ;;  %v1656_v56 = vmul.f32 %v2788_v27, %v1640_v40  ;;  %v2790_v44 = vpop.eup %2789  ;;  %v1501_v40 = vmul.f32 %v3572_v45, %v3572_v45 }
 0x29b   : > { %v1694_v22 = vmul.f32 %v1686_v26, %v1670_v41  ;;  %v2792_v60 = vpop.eup %2791  ;;  %v1655_v5 = vmul.f32 %v2790_v44, %v3547_v12  ;;  %2799 = vrcp.f32 %v1413_v49 }
 0x29c   : > { %v1482_v48 = vmul.f32 %v1474_v47, %v1442_v10  ;;  %v1444_v15 = vmul.f32 %v2786_v30, %v1436_v19  ;;  %v1664_v25 = vsub.f32 2.0, %v1656_v56  ;;  %v3589_v10 = vadd.f32 1.0, %v1633_v61  ;;  %v2794_v56 = vpop.eup %2793 }
 0x29d   : > { %v1702_v37 = vadd.f32 0.3480242, %v1694_v22  ;;  %2801 = vpow2.f32 %v1746_v35  ;;  %v3594_v30 = vmul.f32 %v2784_v57, %v1435_v42  ;;  %v3597_v62 = vpop.eup %2795  ;;  %v1509_v26 = vmul.f32 -0.5, %v1501_v40 }
 0x29e   : > { %v1490_v33 = vmul.f32 0.5, %v1482_v48  ;;  %v1452_v50 = vmul.f32 0.7478556, %v1444_v15  ;;  %v1672_v1 = vmul.f32 %v2788_v27, %v1664_v25  ;;  %2803 = vrcp.f32 %v3589_v10  ;;  %v2798_v21 = vpop.eup %2797 }
 0x29f   : > { %v1710_v0 = vmul.f32 %v1702_v37, %v1670_v41  ;;  %v1510_v41 = vmul.f32 -0.5, %v1502_v59  ;;  %2805 = vpow2.f32 %v1744_v16  ;;  %v1663_v48 = vsub.f32 2.0, %v1655_v5 }
 0x2a0   : > { %v1460_v22 = vadd.f32 -0.0958798, %v1452_v50  ;;  %v1680_v19 = vmul.f32 0.7478556, %v1672_v1  ;;  %v1530_v47 = vmul.f32 %v2782_v39, %v1490_v33  ;;  %v1368_v35 = vrot.slane %v3553_v53, 7 }
 0x2a1   : > { %v1718_v55 = vmul.f32 0.5, %v1710_v0  ;;  %v1430_v25 = vmul.f32 %v2794_v56, %v3567_v4  ;;  %v1596_v57 = vrot.slane %v3560_v34, 7  ;;  %v1737_v42 = vmul.f32 -0.5, %v1729_v24 }
 0x2a2   : > { %v1468_v12 = vmul.f32 %v1460_v22, %v1444_v15  ;;  %v1688_v27 = vadd.f32 -0.0958798, %v1680_v19  ;;  %v1546_v61 = vsub.f32 1.0, %v1530_v47  ;;  %v1451_v59 = vmul.f32 0.7478556, %v3594_v30 }
 0x2a3   : > { %v1438_v33 = vsub.f32 2.0, %v1430_v25  ;;  %v1522_v50 = vmul.f32 1.442695, %v1510_v41  ;;  %v1520_v0 = vmul.f32 1.442695, %v1509_v26  ;;  %v1591_v4 = vsel %vm1357_vm0, %v1586_v54, %v1590_v8 }
 0x2a4   : > { %v1476_v37 = vadd.f32 0.3480242, %v1468_v12  ;;  %v1696_v39 = vmul.f32 %v1688_v27, %v1672_v1  ;;  %v1758_v5 = vmul.f32 %v2792_v60, %v1718_v55  ;;  %v3610_v22 = vmul.f32 %v2790_v44, %v1663_v48 }
 0x2a5   : > { %v1446_v19 = vmul.f32 %v2794_v56, %v1438_v33  ;;  %v3613_v24 = vadd.f32 %v1591_v4, %v3427_v46  ;;  %v3945_v27 = vrot.slane %v3497_v51, 7  ;;  %v2800_v26 = vpop.eup %2799  ;;  %v1554_v54 = vsel %vm1538_vm1, %v1546_v61, %v1530_v47 }
 0x2a6   : > { %v1484_v16 = vmul.f32 %v1476_v37, %v1444_v15  ;;  %v1704_v40 = vadd.f32 0.3480242, %v1696_v39  ;;  %v1748_v15 = vmul.f32 1.442695, %v1737_v42  ;;  %2807 = vpow2.f32 %v1522_v50 }
 0x2a7   : > { %v1367_v29 = vsel %vm1357_vm0, %v3946_v14, %v3945_v27  ;;  %v1454_v8 = vmul.f32 0.7478556, %v1446_v19  ;;  %v1618_v44 = vand.u32 2147483647, %v3613_v24  ;;  %v2802_v60 = vpop.eup %2801  ;;  %v1429_v55 = vmul.f32 %v2800_v26, %v1413_v49 }
 0x2a8   : > { %v1492_v41 = vmul.f32 0.5, %v1484_v16  ;;  %v1712_v12 = vmul.f32 %v1704_v40, %v1672_v1  ;;  %v1730_v1 = vmul.f32 %v3613_v24, %v3613_v24  ;;  %v2804_v51 = vpop.eup %2803  ;;  %v1774_v48 = vsub.f32 1.0, %v1758_v5 }
 0x2a9   : > { %v1462_v18 = vadd.f32 -0.0958798, %v1454_v8  ;;  %v1626_v25 = vmul.f32 0.70710677, %v1618_v44  ;;  %v3627_v37 = vadd.f32 %v1367_v29, %v3451_v23  ;;  %v3629_v47 = vpop.eup %2805  ;;  %v1657_v49 = vmul.f32 %v2804_v51, %v3589_v10 }
 0x2aa   : > { %v1532_v46 = vmul.f32 %v2798_v21, %v1492_v41  ;;  %v1720_v56 = vmul.f32 0.5, %v1712_v12  ;;  %v1679_v21 = vmul.f32 0.7478556, %v3610_v22  ;;  %v3634_v61 = vmul.f32 %v1554_v54, %v3470_v20 }
 0x2ab   : > { %v1470_v33 = vmul.f32 %v1462_v18, %v1446_v19  ;;  %v1634_v50 = vmul.f32 0.47047, %v1626_v25  ;;  %v1392_v16 = vand.u32 2147483647, %v3627_v37  ;;  %v3637_v40 = vadd.f32 -0.0958798, %v1451_v59 }
 0x2ac   : > { %v1548_v39 = vsub.f32 1.0, %v1532_v46  ;;  %v1760_v42 = vmul.f32 %v2802_v60, %v1720_v56  ;;  %v1437_v4 = vsub.f32 2.0, %v1429_v55  ;;  %2809 = vpow2.f32 %v1520_v0 }
 0x2ad   : > { %v1738_v41 = vmul.f32 -0.5, %v1730_v1  ;;  %v1782_v12 = vsel %vm1766_vm2, %v1774_v48, %v1758_v5  ;;  %2811 = vpow2.f32 %v1748_v15  ;;  %v1478_v27 = vadd.f32 0.3480242, %v1470_v33 }
 0x2ae   : > { %v1642_v14 = vadd.f32 1.0, %v1634_v50  ;;  %v1556_v10 = vsel %vm1540_vm3, %v1548_v39, %v1532_v46  ;;  %v1776_v20 = vsub.f32 1.0, %v1760_v42  ;;  %v1665_v29 = vsub.f32 2.0, %v1657_v49 }
 0x2af   : > { %v1400_v54 = vmul.f32 0.70710677, %v1392_v16  ;;  %v1986_v59 = vrot.slane %v3634_v61, 7  ;;  %v3645_v8 = vadd.f32 -0.0958798, %v1679_v21  ;;  %v1486_v0 = vmul.f32 %v1478_v27, %v1446_v19 }
 0x2b0   : > { %2813 = vrcp.f32 %v1642_v14  ;;  %v3648_v44 = vmul.f32 %v1782_v12, %v3482_v28  ;;  %v3650_v5 = vmul.f32 %v2800_v26, %v1437_v4  ;;  %v1750_v15 = vmul.f32 1.442695, %v1738_v41  ;;  %v2808_v56 = vpop.eup %2807 }
 0x2b1   : > { %v1408_v60 = vmul.f32 0.47047, %v1400_v54  ;;  %v3653_v46 = vmul.f32 %v1556_v10, %v3512_v63  ;;  %v1494_v55 = vmul.f32 0.5, %v1486_v0  ;;  %v1504_v1 = vmul.f32 %v3627_v37, %v3627_v37 }
 0x2b2   : > { %v3947_v48 = vrot.slane %v3507_v6, 7  ;;  %v3948_v19 = vrot.slane %v3504_v52, 7  ;;  %v1784_v28 = vsel %vm1768_vm4, %v1776_v20, %v1760_v42  ;;  %v3664_v26 = vmul.f32 %v2804_v51, %v1665_v29 }
 0x2b3   : > { %v1416_v25 = vadd.f32 1.0, %v1408_v60  ;;  %v1534_v63 = vmul.f32 %v2808_v56, %v1494_v55  ;;  %v3949_v21 = vrot.slane %v3461_v36, 7  ;;  %v3950_v49 = vrot.slane %v3458_v38, 7 }
 0x2b4   : > { %v1595_v18 = vsel %vm1357_vm0, %v3948_v19, %v3947_v48  ;;  %v3951_v52 = vrot.slane %v3476_v11, 7  ;;  %v3952_v33 = vrot.slane %v3500_v32, 7  ;;  %v3953_v51 = vrot.slane %v3550_v7, 7 }
 0x2b5   : > { %v3667_v39 = vadd.f32 %v1595_v18, %v3451_v23  ;;  %v1365_v6 = vsel %vm1357_vm0, %v3950_v49, %v3949_v21  ;;  %v1453_v42 = vmul.f32 0.7478556, %v3650_v5  ;;  %2815 = vrcp.f32 %v1416_v25 }
 0x2b6   : > { %v1593_v50 = vsel %vm1357_vm0, %v3952_v33, %v3951_v52  ;;  %v1369_v23 = vsel %vm1357_vm0, %v3953_v51, %v1368_v35  ;;  %v1550_v16 = vsub.f32 1.0, %v1534_v63  ;;  %v1512_v11 = vmul.f32 -0.5, %v1504_v1  ;;  %v3694_v53 = vpop.eup %2809 }
 0x2b7   : > { %v1620_v36 = vand.u32 2147483647, %v3667_v39  ;;  %v1732_v38 = vmul.f32 %v3667_v39, %v3667_v39  ;;  %v3689_v32 = vadd.f32 %v1365_v6, %v3429_v3  ;;  %v3692_v4 = vadd.f32 %v1593_v50, %v3429_v3  ;;  %v3703_v27 = vpop.eup %2811 }
 0x2b8   : > { %v1808_v7 = vrot.slane %v3648_v44, 7  ;;  %v3698_v35 = vmul.f32 %v1784_v28, %v3520_v17  ;;  %v3701_v12 = vadd.f32 %v1369_v23, %v3453_v13  ;;  %v1681_v10 = vmul.f32 0.7478556, %v3664_v26 }
 0x2b9   : > { %v1628_v41 = vmul.f32 0.70710677, %v1620_v36  ;;  %v1558_v20 = vsel %vm1542_vm5, %v1550_v16, %v1534_v63  ;;  %2817 = vpow2.f32 %v1750_v15  ;;  %v1391_v3 = vand.u32 2147483647, %v3689_v32 }
 0x2ba   : > { %v1992_v29 = vrot.slane %v3653_v46, 7  ;;  %v1740_v0 = vmul.f32 -0.5, %v1732_v38  ;;  %v1619_v17 = vand.u32 2147483647, %v3692_v4  ;;  %v2814_v60 = vpop.eup %2813  ;;  %v3711_v56 = vadd.f32 -0.0958798, %v1453_v42 }
 0x2bb   : > { %v1636_v54 = vmul.f32 0.47047, %v1628_v41  ;;  %v1526_v55 = vmul.f32 1.442695, %v1512_v11  ;;  %v1399_v1 = vmul.f32 0.70710677, %v1391_v3  ;;  %v1503_v48 = vmul.f32 %v3689_v32, %v3689_v32 }
 0x2bc   : > { %v1814_v19 = vrot.slane %v3698_v35, 7  ;;  %v3717_v15 = vmul.f32 %v1558_v20, %v3534_v2  ;;  %v1658_v18 = vmul.f32 %v2814_v60, %v1642_v14  ;;  %v1689_v63 = vadd.f32 -0.0958798, %v1681_v10 }
 0x2bd   : > { %v1644_v28 = vadd.f32 1.0, %v1636_v54  ;;  %v1407_v21 = vmul.f32 0.47047, %v1399_v1  ;;  %v1627_v49 = vmul.f32 0.70710677, %v1619_v17  ;;  %v1731_v6 = vmul.f32 %v3692_v4, %v3692_v4 }
 0x2be   : > { %v1666_v52 = vsub.f32 2.0, %v1658_v18  ;;  %v1754_v33 = vmul.f32 1.442695, %v1740_v0  ;;  %v1393_v50 = vand.u32 2147483647, %v3701_v12  ;;  %v1511_v23 = vmul.f32 -0.5, %v1503_v48 }
 0x2bf   : > { %2819 = vrcp.f32 %v1644_v28  ;;  %v1415_v51 = vadd.f32 1.0, %v1407_v21  ;;  %v1635_v42 = vmul.f32 0.47047, %v1627_v49  ;;  %v2816_v36 = vpop.eup %2815  ;;  %v1987_v14 = vrot.slane %v3717_v15, 7 }
 0x2c0   : > { %2821 = vpow2.f32 %v1526_v55  ;;  %v1674_v2 = vmul.f32 %v2814_v60, %v1666_v52  ;;  %v1401_v38 = vmul.f32 0.70710677, %v1393_v50  ;;  %v1505_v16 = vmul.f32 %v3701_v12, %v3701_v12 }
 0x2c1   : > { %v1432_v11 = vmul.f32 %v2816_v36, %v1416_v25  ;;  %2823 = vrcp.f32 %v1415_v51  ;;  %v1643_v41 = vadd.f32 1.0, %v1635_v42  ;;  %v1739_v10 = vmul.f32 -0.5, %v1731_v6 }
 0x2c2   : > { %v1682_v20 = vmul.f32 0.7478556, %v1674_v2  ;;  %2825 = vpow2.f32 %v1754_v33  ;;  %v1409_v3 = vmul.f32 0.47047, %v1401_v38  ;;  %v3954_v54 = vrot.slane %v3556_v43, 7 }
 0x2c3   : > { %v2818_v17 = vpop.eup %2817  ;;  %v1440_v60 = vsub.f32 2.0, %v1432_v11  ;;  %2827 = vrcp.f32 %v1643_v41  ;;  %v1695_v25 = vmul.f32 %v3645_v8, %v3610_v22  ;;  %v1513_v18 = vmul.f32 -0.5, %v1505_v16 }
 0x2c4   : > { %v1597_v0 = vsel %vm1357_vm0, %v3954_v54, %v1596_v57  ;;  %v1690_v1 = vadd.f32 -0.0958798, %v1682_v20  ;;  %v1417_v48 = vadd.f32 1.0, %v1409_v3  ;;  %v1697_v21 = vmul.f32 %v1689_v63, %v3664_v26 }
 0x2c5   : > { %v3731_v55 = vadd.f32 %v1597_v0, %v3453_v13  ;;  %v1448_v49 = vmul.f32 %v2816_v36, %v1440_v60  ;;  %v1524_v34 = vmul.f32 1.442695, %v1511_v23  ;;  %v1752_v6 = vmul.f32 1.442695, %v1739_v10 }
 0x2c6   : > { %v1698_v57 = vmul.f32 %v1690_v1, %v1674_v2  ;;  %2829 = vrcp.f32 %v1417_v48  ;;  %v1703_v52 = vadd.f32 0.3480242, %v1695_v25  ;;  %v1705_v33 = vadd.f32 0.3480242, %v1697_v21 }
 0x2c7   : > { %v1621_v43 = vand.u32 2147483647, %v3731_v55  ;;  %v1456_v50 = vmul.f32 0.7478556, %v1448_v49  ;;  %v1733_v42 = vmul.f32 %v3731_v55, %v3731_v55  ;;  %v1467_v8 = vmul.f32 %v3637_v40, %v3594_v30 }
 0x2c8   : > { %v1706_v16 = vadd.f32 0.3480242, %v1698_v57  ;;  %v1528_v63 = vmul.f32 1.442695, %v1513_v18  ;;  %v1711_v23 = vmul.f32 %v1703_v52, %v3610_v22  ;;  %v1713_v36 = vmul.f32 %v1705_v33, %v3664_v26 }
 0x2c9   : > { %v1629_v13 = vmul.f32 0.70710677, %v1621_v43  ;;  %v2820_v38 = vpop.eup %2819  ;;  %vm1770_vm6 = vcmp.ge.f32.partialorder %v3613_v24, 0.0  ;;  %v1464_v10 = vadd.f32 -0.0958798, %v1456_v50  ;;  %2831 = vpow2.f32 %v1524_v34 }
 0x2ca   : > { %v2822_v11 = vpop.eup %2821  ;;  %v1660_v20 = vmul.f32 %v2820_v38, %v1644_v28  ;;  %v1714_v54 = vmul.f32 %v1706_v16, %v1674_v2  ;;  %2833 = vpow2.f32 %v1752_v6  ;;  %v1719_v0 = vmul.f32 0.5, %v1711_v23 }
 0x2cb   : > { %v1637_v3 = vmul.f32 0.47047, %v1629_v13  ;;  %v1475_v60 = vadd.f32 0.3480242, %v1467_v8  ;;  %v2824_v25 = vpop.eup %2823  ;;  %v1472_v40 = vmul.f32 %v1464_v10, %v1448_v49  ;;  %v1741_v18 = vmul.f32 -0.5, %v1733_v42 }
 0x2cc   : > { %v1668_v1 = vsub.f32 2.0, %v1660_v20  ;;  %v3746_v22 = vpop.eup %2825  ;;  %v1722_v26 = vmul.f32 0.5, %v1714_v54  ;;  %v1431_v43 = vmul.f32 %v2824_v25, %v1415_v51  ;;  %2835 = vpow2.f32 %v1528_v63 }
 0x2cd   : > { %v3744_v21 = vadd.f32 1.0, %v1637_v3  ;;  %v1721_v57 = vmul.f32 0.5, %v1713_v36  ;;  %v2828_v52 = vpop.eup %2827  ;;  %v1480_v28 = vadd.f32 0.3480242, %v1472_v40  ;;  %v1759_v34 = vmul.f32 %v3629_v47, %v1719_v0 }
 0x2ce   : > { %v1676_v2 = vmul.f32 %v2820_v38, %v1668_v1  ;;  %v1762_v6 = vmul.f32 %v2818_v17, %v1722_v26  ;;  %vm1544_vm8 = vcmp.ge.f32.partialorder %v3627_v37, 0.0  ;;  %v1439_v33 = vsub.f32 2.0, %v1431_v43 }
 0x2cf   : > { %2837 = vrcp.f32 %v3744_v21  ;;  %v1659_v50 = vmul.f32 %v2828_v52, %v1643_v41  ;;  %v1483_v13 = vmul.f32 %v1475_v60, %v3594_v30  ;;  %v1488_v42 = vmul.f32 %v1480_v28, %v1448_v49 }
 0x2d0   : > { %v1684_v51 = vmul.f32 0.7478556, %v1676_v2  ;;  %v1756_v8 = vmul.f32 1.442695, %v1741_v18  ;;  %v1469_v16 = vmul.f32 %v3711_v56, %v3650_v5  ;;  %v2830_v63 = vpop.eup %2829  ;;  %v1778_v23 = vsub.f32 1.0, %v1762_v6 }
 0x2d1   : > { %v1447_v38 = vmul.f32 %v2824_v25, %v1439_v33  ;;  %v1667_v36 = vsub.f32 2.0, %v1659_v50  ;;  %v3756_v10 = vmul.f32 %v3703_v27, %v1721_v57  ;;  %v1496_v47 = vmul.f32 0.5, %v1488_v42 }
 0x2d2   : > { %v1692_v17 = vadd.f32 -0.0958798, %v1684_v51  ;;  %v1433_v20 = vmul.f32 %v2830_v63, %v1417_v48  ;;  %v1775_v3 = vsub.f32 1.0, %v1759_v34  ;;  %v1786_v30 = vsel %vm1770_vm6, %v1778_v23, %v1762_v6 }
 0x2d3   : > { %v1455_v41 = vmul.f32 0.7478556, %v1447_v38  ;;  %v1675_v49 = vmul.f32 %v2828_v52, %v1667_v36  ;;  %v1491_v54 = vmul.f32 0.5, %v1483_v13  ;;  %v2832_v56 = vpop.eup %2831  ;;  %v1794_v0 = vmul.f32 %v1786_v30, %v3613_v24 }
 0x2d4   : > { %v1536_v60 = vmul.f32 %v2822_v11, %v1496_v47  ;;  %v1700_v25 = vmul.f32 %v1692_v17, %v1676_v2  ;;  %v1441_v40 = vsub.f32 2.0, %v1433_v20  ;;  %v2834_v27 = vpop.eup %2833  ;;  %2839 = vpow2.f32 %v1756_v8 }
 0x2d5   : > { %v1463_v1 = vadd.f32 -0.0958798, %v1455_v41  ;;  %v1683_v18 = vmul.f32 0.7478556, %v1675_v49  ;;  %v1777_v48 = vsub.f32 1.0, %v3756_v10  ;;  %v1809_v26 = vrot.slane %v1794_v0, 7 }
 0x2d6   : > { %v1552_v43 = vsub.f32 1.0, %v1536_v60  ;;  %v1708_v57 = vadd.f32 0.3480242, %v1700_v25  ;;  %v1449_v28 = vmul.f32 %v2830_v63, %v1441_v40  ;;  %v2836_v6 = vpop.eup %2835  ;;  %vm1772_vm10 = vcmp.ge.f32.partialorder %v3667_v39, 0.0 }
 0x2d7   : > { %v1471_v52 = vmul.f32 %v1463_v1, %v1447_v38  ;;  %v1691_v33 = vadd.f32 -0.0958798, %v1683_v18  ;;  %v1783_v24 = vsel %vm1767_vm7, %v1775_v3, %v1759_v34  ;;  %v1531_v11 = vmul.f32 %v3597_v62, %v1491_v54 }
 0x2d8   : > { %v1560_v13 = vsel %vm1544_vm8, %v1552_v43, %v1536_v60  ;;  %v1716_v42 = vmul.f32 %v1708_v57, %v1676_v2  ;;  %v1457_v51 = vmul.f32 0.7478556, %v1449_v28  ;;  %v1810_v8 = vsel %vm1357_vm0, %v1808_v7, %v1809_v26 }
 0x2d9   : > { %v2838_v50 = vpop.eup %2837  ;;  %v1568_v63 = vmul.f32 %v1560_v13, %v3627_v37  ;;  %v1479_v23 = vadd.f32 0.3480242, %v1471_v52  ;;  %v1699_v36 = vmul.f32 %v1691_v33, %v1675_v49  ;;  %vm1543_vm11 = vcmp.ge.f32.partialorder %v3689_v32, 0.0 }
 0x2da   : > { %v1661_v47 = vmul.f32 %v2838_v50, %v3744_v21  ;;  %v1724_v17 = vmul.f32 0.5, %v1716_v42  ;;  %v1465_v62 = vadd.f32 -0.0958798, %v1457_v51  ;;  %v3775_v34 = vpack.c.bf16 %v1809_v26, %v1810_v8 }
 0x2db   : > { %v1547_v20 = vsub.f32 1.0, %v1531_v11  ;;  %v1993_v3 = vrot.slane %v1568_v63, 7  ;;  %v1487_v2 = vmul.f32 %v1479_v23, %v1447_v38  ;;  %v1707_v30 = vadd.f32 0.3480242, %v1699_v36 }
 0x2dc   : > { %v1669_v41 = vsub.f32 2.0, %v1661_v47  ;;  %v1764_v44 = vmul.f32 %v3746_v22, %v1724_v17  ;;  %vm1771_vm12 = vcmp.ge.f32.partialorder %v3692_v4, 0.0  ;;  %v1473_v37 = vmul.f32 %v1465_v62, %v1449_v28 }
 0x2dd   : > { %v1555_v7 = vsel %vm1539_vm9, %v1547_v20, %v1531_v11  ;;  %v1477_v21 = vadd.f32 0.3480242, %v1469_v16  ;;  %v1495_v54 = vmul.f32 0.5, %v1487_v2  ;;  %v1715_v0 = vmul.f32 %v1707_v30, %v1675_v49 }
 0x2de   : > { %v1677_v60 = vmul.f32 %v2838_v50, %v1669_v41  ;;  %v1563_v25 = vmul.f32 %v1555_v7, %v3487_v31  ;;  %v1780_v40 = vsub.f32 1.0, %v1764_v44  ;;  %v1481_v38 = vadd.f32 0.3480242, %v1473_v37  ;;  %v2840_v18 = vpop.eup %2839 }
 0x2df   : > { %v1485_v1 = vmul.f32 %v1477_v21, %v3650_v5  ;;  %v1988_v22 = vsel %vm1357_vm0, %v1986_v59, %v1987_v14  ;;  %v1535_v26 = vmul.f32 %v2832_v56, %v1495_v54  ;;  %v1723_v16 = vmul.f32 0.5, %v1715_v0  ;;  %v1799_v54 = vld [vmem:[%s3930_s5] sm:$0x3] }
 0x2e0   : > { %v1685_v43 = vmul.f32 0.7478556, %v1677_v60  ;;  %v1791_v49 = vmul.f32 %v1783_v24, %v3530_v9  ;;  %v1788_v31 = vsel %vm1772_vm10, %v1780_v40, %v1764_v44  ;;  %v1489_v57 = vmul.f32 %v1481_v38, %v1449_v28 }
 0x2e1   : > { %v1493_v52 = vmul.f32 0.5, %v1485_v1  ;;  %v2656_v5 = vpack.c.bf16 %v1987_v14, %v1988_v22  ;;  %v1796_v33 = vmul.f32 %v1788_v31, %v3667_v39  ;;  %v1551_v11 = vsub.f32 1.0, %v1535_v26  ;;  %v1798_v1 = vld [vmem:[%s3929_s4] sm:$0x3] }
 0x2e2   : > { %v1763_v61 = vmul.f32 %v2834_v27, %v1723_v16  ;;  %v1693_v50 = vadd.f32 -0.0958798, %v1685_v43  ;;  %v1497_v59 = vmul.f32 0.5, %v1489_v57  ;;  %v1989_v13 = vrot.slane %v1563_v25, 7 }
 0x2e3   : > { %v1533_v56 = vmul.f32 %v3694_v53, %v1493_v52  ;;  %v1994_v9 = vsel %vm1357_vm0, %v1992_v29, %v1993_v3  ;;  %v1815_v24 = vrot.slane %v1796_v33, 7  ;;  %v1559_v28 = vsel %vm1543_vm11, %v1551_v11, %v1535_v26 }
 0x2e4   : > { %v1779_v42 = vsub.f32 1.0, %v1763_v61  ;;  %v1701_v15 = vmul.f32 %v1693_v50, %v1677_v60  ;;  %v1567_v14 = vmul.f32 %v1559_v28, %v3689_v32  ;;  %v1537_v39 = vmul.f32 %v2836_v6, %v1497_v59 }
 0x2e5   : > { %v1549_v51 = vsub.f32 1.0, %v1533_v56  ;;  %v2662_v27 = vpack.c.bf16 %v1993_v3, %v1994_v9  ;;  %v1811_v53 = vrot.slane %v1791_v49, 7  ;;  %v1816_v46 = vsel %vm1357_vm0, %v1814_v19, %v1815_v24 }
 0x2e6   : > { %v1787_v8 = vsel %vm1771_vm12, %v1779_v42, %v1763_v61  ;;  %v1709_v63 = vadd.f32 0.3480242, %v1701_v15  ;;  %v1553_v23 = vsub.f32 1.0, %v1537_v39  ;;  %v2650_v36 = vpack.c.bf16 %v1815_v24, %v1816_v46 }
 0x2e7   : > { %v1795_v29 = vmul.f32 %v1787_v8, %v3692_v4  ;;  %v1990_v47 = vrot.slane %v1567_v14, 7  ;;  %vm1545_vm1 = vcmp.ge.f32.partialorder %v3701_v12, 0.0  ;;  %v1557_v6 = vsel %vm1541_vm13, %v1549_v51, %v1533_v56 }
 0x2e8   : > { %v1717_v32 = vmul.f32 %v1709_v63, %v1677_v60  ;;  %v1561_v17 = vsel %vm1545_vm1, %v1553_v23, %v1537_v39  ;;  %v1565_v35 = vmul.f32 %v1557_v6, %v3572_v45  ;;  %v1785_v3 = vsel %vm1769_vm14, %v1777_v48, %v3756_v10 }
 0x2e9   : > { %v1812_v62 = vrot.slane %v1795_v29, 7  ;;  %v1991_v20 = vsel %vm1357_vm0, %v1989_v13, %v1990_v47  ;;  %v1569_v19 = vmul.f32 %v1561_v17, %v3701_v12  ;;  %vm2923_vm2 = vmmov 1  }
 0x2ea   : > { %v1725_v4 = vmul.f32 0.5, %v1717_v32  ;;  %v2653_v2 = vpack.c.bf16 %v1990_v47, %v1991_v20  ;;  %vm3820_vm3 = vmpackc.low %vm1357_vm0, %vm2923_vm2  ;;  %v1995_v44 = vrot.slane %v1565_v35, 7  ;;  %v1793_v12 = vmul.f32 %v1785_v3, %v3577_v58 }
 0x2eb   : > { %v1813_v30 = vsel %vm1357_vm0, %v1811_v53, %v1812_v62  ;;  %v1996_v45 = vrot.slane %v1569_v19, 7  ;;  %vm1773_vm4 = vcmp.ge.f32.partialorder %v3731_v55, 0.0  ;;  %vm1824_vm5 = vcmask 72704  }
 0x2ec   : > { %v1765_v37 = vmul.f32 %v2840_v18, %v1725_v4  ;;  %v2641_v7 = vpack.c.bf16 %v1812_v62, %v1813_v30  ;;  %v1817_v60 = vrot.slane %v1793_v12, 7 }
 0x2ed   : > { %v1997_v10 = vsel %vm1357_vm0, %v1995_v44, %v1996_v45 }
 0x2ee   : > { %v1781_v21 = vsub.f32 1.0, %v1765_v37  ;;  %2643 = vmatprep.subr.msk.bf16.mxu0 %vm3820_vm3, %v2641_v7  ;;  %v2659_v48 = vpack.c.bf16 %v1996_v45, %v1997_v10 }
 0x2ef   : > { %2646 = vmatpush1.bf16.msk.msra.mxu0 %vm3820_vm3, %v3775_v34  ;;  %v3957_v34 = vmov 0.0  }
 0x2f0   : > { %v1789_v0 = vsel %vm1773_vm4, %v1781_v21, %v1765_v37  ;;  %2655 = vmatprep.subr.msk.bf16.mxu0 %vm3820_vm3, %v2653_v2 }
 0x2f1   : > { %v1797_v58 = vmul.f32 %v1789_v0, %v3731_v55  ;;  %v2159_v55 = vpop.permute.xlu1 %2158 }
 0x2f2   : > { %2441 = vmatmul.mubr.msk.f32.vlgmr.msra.gmra.mrb[12].mxu0 %vm1824_vm5, %v1799_v54 }
 0x2f3   : > { %v1818_v25 = vrot.slane %v1797_v58, 7  ;;  %2658 = vmatpush1.bf16.msk.msra.mxu0 %vm3820_vm3, %v2656_v5  ;;  %2077 = vmatprep.mubr.f32.mxu0 %v3957_v34 }
 0x2f5   : > { %v1819_v40 = vsel %vm1357_vm0, %v1817_v60, %v1818_v25 }
 0x2f6   : > { %v2647_v38 = vpack.c.bf16 %v1818_v25, %v1819_v40 }
 0x2f8   : > { %2649 = vmatprep.subr.msk.bf16.mxu1 %vm3820_vm3, %v2647_v38 }
 0x2f9   : > { %2652 = vmatpush1.bf16.msk.msra.mxu1 %vm3820_vm3, %v2650_v36 }
 0x2fa   : > { %2661 = vmatprep.subr.msk.bf16.mxu1 %vm3820_vm3, %v2659_v48  ;;  %2447 = vmatmul.mubr.msk.f32.vlgmr.msra.gmra.mrb[12].mxu0 %vm1824_vm5, %v1798_v1 }
 0x2fc   : > { %2444 = vmatmul.mubr.msk.f32.vlgmr.msra.gmra.mrb[12].mxu1 %vm1824_vm5, %v1799_v54 }
 0x2fd   : > { %2664 = vmatpush1.bf16.msk.msra.mxu1 %vm3820_vm3, %v2662_v27  ;;  %2148 = vmatprep.mubr.f32.mxu1 %v3957_v34 }
 0x304   : > { %2450 = vmatmul.mubr.msk.f32.vlgmr.msra.gmra.mrb[12].mxu1 %vm1824_vm5, %v1798_v1 }
 0x3cd   : > { %v2079_v22 = vpop.f32.mrb[12].mxu0 }
 0x3ce   : > { %v2161_v18 = vadd.f32 %v2159_v55, %v2079_v22  ;;  %v2081_v26 = vpop.f32.mrb[13].mxu0 }
 0x3cf   : > { %v2162_v16 = vadd.f32 %v2159_v55, %v2081_v26 }
 0x3d0   : > { %v2165_v43 = vsel %vm1228_vm15, %v2161_v18, -inf }
 0x3d1   : > { %v2166_v49 = vrot.slane %v2165_v43, 4  ;;  %v2172_v31 = vsel %vm1228_vm15, %v2162_v16, -inf }
 0x3d2   : > { %v2173_v57 = vrot.slane %v2172_v31, 4 }
 0x3d3   : > { %v2167_v52 = vmax.f32 %v2165_v43, %v2166_v49 }
 0x3d4   : > { %v2174_v5 = vmax.f32 %v2172_v31, %v2173_v57 }
 0x3d5   : > { %v2168_v33 = vrot.slane %v2167_v52, 2 }
 0x3d6   : > { %v2175_v11 = vrot.slane %v2174_v5, 2 }
 0x3d7   : > { %v2169_v61 = vmax.f32 %v2167_v52, %v2168_v33  ;;  %v2150_v50 = vpop.f32.mrb[12].mxu1 }
 0x3d8   : > { %v2163_v59 = vadd.f32 %v2159_v55, %v2150_v50  ;;  %v2176_v13 = vmax.f32 %v2174_v5, %v2175_v11  ;;  %v2152_v56 = vpop.f32.mrb[13].mxu1 }
 0x3d9   : > { %v2170_v9 = vrot.slane %v2169_v61, 1  ;;  %v2164_v24 = vadd.f32 %v2159_v55, %v2152_v56 }
 0x3da   : > { %v2179_v28 = vsel %vm1228_vm15, %v2163_v59, -inf  ;;  %v2177_v42 = vrot.slane %v2176_v13, 1 }
 0x3db   : > { %v2171_v15 = vmax.f32 %v2169_v61, %v2170_v9  ;;  %v2180_v14 = vrot.slane %v2179_v28, 4  ;;  %v2186_v39 = vsel %vm1228_vm15, %v2164_v24, -inf }
 0x3dc   : > { %v2178_v51 = vmax.f32 %v2176_v13, %v2177_v42  ;;  %v2187_v27 = vrot.slane %v2186_v39, 4 }
 0x3dd   : > { %v2193_v8 = vsub.f32 %v2161_v18, %v2171_v15  ;;  %v2181_v63 = vmax.f32 %v2179_v28, %v2180_v14  ;;  %v2924_v14 = vmov 1983009808  }
 0x3de   : > { %v2194_v53 = vsub.f32 %v2162_v16, %v2178_v51  ;;  %v2188_v46 = vmax.f32 %v2186_v39, %v2187_v27  ;;  %v2260_v39 = vunpack.c.l.s4 %v2924_v14  ;;  %v2262_v51 = vlaneseq }
 0x3df   : > { %v2197_v29 = vmul.f32 1.442695, %v2193_v8  ;;  %v2182_v23 = vrot.slane %v2181_v63, 2 }
 0x3e0   : > { %v2199_v36 = vmul.f32 1.442695, %v2194_v53  ;;  %v2189_v47 = vrot.slane %v2188_v46, 2 }
 0x3e1   : > { %2841 = vpow2.f32 %v2197_v29  ;;  %v2183_v32 = vmax.f32 %v2181_v63, %v2182_v23  ;;  %v2263_v29 = vshrl.u32 %v2262_v51, 7 }
 0x3e2   : > { %2843 = vpow2.f32 %v2199_v36  ;;  %v2190_v6 = vmax.f32 %v2188_v46, %v2189_v47  ;;  %v2261_v46 = vunpack.c.0.s8 %v2260_v39 }
 0x3e3   : > { %v2184_v17 = vrot.slane %v2183_v32, 1 }
 0x3e4   : > { %v2191_v62 = vrot.slane %v2190_v6, 1 }
 0x3e5   : > { %v2185_v20 = vmax.f32 %v2183_v32, %v2184_v17 }
 0x3e6   : > { %v2192_v35 = vmax.f32 %v2190_v6, %v2191_v62  ;;  %v2264_v6 = vsub.s32 %v2261_v46, %v2263_v29 }
 0x3e7   : > { %v2195_v19 = vsub.f32 %v2163_v59, %v2185_v20 }
 0x3e8   : > { %v2196_v4 = vsub.f32 %v2164_v24, %v2192_v35 }
 0x3e9   : > { %v2201_v3 = vmul.f32 1.442695, %v2195_v19 }
 0x3ea   : > { %v2203_v2 = vmul.f32 1.442695, %v2196_v4 }
 0x3eb   : > { %v2842_v30 = vpop.eup %2841  ;;  %2845 = vpow2.f32 %v2201_v3 }
 0x3ec   : > { %v2844_v41 = vpop.eup %2843  ;;  %v2205_v44 = vsel %vm1228_vm15, %v2842_v30, 0.0  ;;  %2847 = vpow2.f32 %v2203_v2 }
 0x3ed   : > { %v2206_v37 = vrot.slane %v2205_v44, 4  ;;  %v2212_v7 = vsel %vm1228_vm15, %v2844_v41, 0.0 }
 0x3ee   : > { %v2213_v45 = vrot.slane %v2212_v7, 4 }
 0x3ef   : > { %v2207_v12 = vadd.f32 %v2206_v37, %v2205_v44 }
 0x3f0   : > { %v2214_v21 = vadd.f32 %v2213_v45, %v2212_v7 }
 0x3f1   : > { %v2208_v10 = vrot.slane %v2207_v12, 2 }
 0x3f2   : > { %v2215_v48 = vrot.slane %v2214_v21, 2 }
 0x3f3   : > { %v2209_v54 = vadd.f32 %v2208_v10, %v2207_v12 }
 0x3f4   : > { %v2216_v0 = vadd.f32 %v2215_v48, %v2214_v21 }
 0x3f5   : > { %v2846_v58 = vpop.eup %2845  ;;  %v2210_v60 = vrot.slane %v2209_v54, 1 }
 0x3f6   : > { %v2848_v25 = vpop.eup %2847  ;;  %v2219_v34 = vsel %vm1228_vm15, %v2846_v58, 0.0  ;;  %v2217_v40 = vrot.slane %v2216_v0, 1 }
 0x3f7   : > { %v2211_v38 = vadd.f32 %v2210_v60, %v2209_v54  ;;  %v2220_v1 = vrot.slane %v2219_v34, 4  ;;  %v2226_v55 = vsel %vm1228_vm15, %v2848_v25, 0.0 }
 0x3f8   : > { %v2218_v22 = vadd.f32 %v2217_v40, %v2216_v0  ;;  %v2227_v18 = vrot.slane %v2226_v55, 4 }
 0x3f9   : > { %2849 = vrcp.f32 %v2211_v38  ;;  %v2221_v26 = vadd.f32 %v2220_v1, %v2219_v34 }
 0x3fa   : > { %2851 = vrcp.f32 %v2218_v22  ;;  %v2228_v16 = vadd.f32 %v2227_v18, %v2226_v55 }
 0x3fb   : > { %v2222_v43 = vrot.slane %v2221_v26, 2 }
 0x3fc   : > { %v2229_v49 = vrot.slane %v2228_v16, 2 }
 0x3fd   : > { %v2223_v31 = vadd.f32 %v2222_v43, %v2221_v26 }
 0x3fe   : > { %v2230_v57 = vadd.f32 %v2229_v49, %v2228_v16 }
 0x3ff   : > { %v2224_v52 = vrot.slane %v2223_v31, 1 }
 0x400   : > { %v2231_v5 = vrot.slane %v2230_v57, 1 }
 0x401   : > { %v2225_v33 = vadd.f32 %v2224_v52, %v2223_v31 }
 0x402   : > { %v2232_v11 = vadd.f32 %v2231_v5, %v2230_v57 }
 0x403   : > { %v2850_v61 = vpop.eup %2849  ;;  %2853 = vrcp.f32 %v2225_v33 }
 0x404   : > { %v2852_v50 = vpop.eup %2851  ;;  %v2237_v59 = vmul.f32 %v2850_v61, %v2211_v38  ;;  %2855 = vrcp.f32 %v2232_v11 }
 0x405   : > { %v2238_v13 = vmul.f32 %v2852_v50, %v2218_v22 }
 0x406   : > { %v2241_v56 = vsub.f32 2.0, %v2237_v59 }
 0x407   : > { %v2242_v9 = vsub.f32 2.0, %v2238_v13 }
 0x408   : > { %v2245_v24 = vmul.f32 %v2850_v61, %v2241_v56 }
 0x409   : > { %v2246_v28 = vmul.f32 %v2852_v50, %v2242_v9 }
 0x40a   : > { %v2249_v42 = vmul.f32 %v2842_v30, %v2245_v24 }
 0x40b   : > { %v2250_v15 = vmul.f32 %v2844_v41, %v2246_v28 }
 0x40d   : > { %v2854_v27 = vpop.eup %2853  ;;  %v2257_v8 = vcombine.low %v2249_v42, %v2250_v15 }
 0x40e   : > { %v2856_v63 = vpop.eup %2855  ;;  %v2239_v53 = vmul.f32 %v2854_v27, %v2225_v33 }
 0x40f   : > { %v2240_v23 = vmul.f32 %v2856_v63, %v2232_v11  ;;  %v2265_v35 = vrot.slane %v2257_v8, %v2264_v6 }
 0x410   : > { %v2243_v36 = vsub.f32 2.0, %v2239_v53 }
 0x411   : > { %v2244_v47 = vsub.f32 2.0, %v2240_v23 }
 0x412   : > { %v2247_v32 = vmul.f32 %v2854_v27, %v2243_v36 }
 0x413   : > { %v2248_v17 = vmul.f32 %v2856_v63, %v2244_v47 }
 0x414   : > { %v2251_v62 = vmul.f32 %v2846_v58, %v2247_v32 }
 0x415   : > { %v2252_v20 = vmul.f32 %v2848_v25, %v2248_v17 }
 0x417   : > { %v2258_v19 = vcombine.low %v2251_v62, %v2252_v20  ;;  %2283 = sbr.rel (!%p3004_p5) target bundleno = 1081 (0x439), region = 52 }
 0x419   : > { %v2272_v4 = vrot.slane %v2258_v19, %v2264_v6 }
 0x41b   : > { %v2273_v3 = vcombine.low %v2265_v35, %v2272_v4 }
 0x41d   : > { %2275 = vst [vmem:[%s284_s16] sm:$0xff] %v2273_v3 }
 0x41e   : > { %s3965_s19 = smov (!%p2286_p11, %s2285_s19), 4 }
 0x41f   : > { %s3876_s20 = sshll.u32 %s3965_s19, 5 }
 0x420   : > { %s2290_s21 = ssub.s32 128, %s3876_s20 }
 0x421   : > { %2291 = vsyncadd %s3871_s17, %s2290_s21  ;;  %p2454_p12 = scmp.ne.s32.totalorder %s3876_s20, 0  ;;  %s2460_s22 = sshll.u32 %s2987_s28, 7 }
 0x422   : > { %s3885_s29 = scalar_lea.hbm %s3932_s7, %s2460_s22  ;;  %s2297_s8 = sshll.u32 %s284_s16, 4  ;;  %s2298_s8 = int_to_ptr.vmem [resolvable:$true] %s2297_s8 }
 0x423   : > { %s2857_s9 = scalar_lea.vmem %s2298_s8, %s3876_s20  ;;  %s2925_s14 = smov [#allocation2]  }
 0x424   : > { %p2858_p13 = scmp.ne.s32.totalorder %s2298_s8, %s2857_s9  ;;  %s2861_s13 = sshll.u32 %s2925_s14, 4  ;;  %s2862_s13 = int_to_ptr.vmem [resolvable:$false] %s2861_s13 }
 0x425   : > { %s2863_s15 = scalar_lea.vmem %s2862_s13, 256  ;;  %p2864_p2 = scmp.lt.s32.totalorder %s2298_s8, %s2862_s13 }
 0x426   : > { %p2859_p0 = pnand %p2858_p13, %p2454_p12  ;;  %p2865_p3 = scmp.lt.s32.totalorder %s2863_s15, %s2857_s9 }
 0x428   : > { %p2860_p1 = pneg %p2859_p0  ;;  %p2866_p4 = por %p2865_p3, %p2864_p2 }
 0x42a   : > { %p2867_p5 = pnand %p2866_p4, %p2860_p1 }
 0x42c   : > { %2870 = shalt.err (!%p2867_p5)
}
 0x42d   : > { %s2871_s28 = scalar_lea.hbm %s3885_s29, %s3876_s20  ;;  %s2875_s19 = scalar_lea.hbm %s3932_s7, 160 }
 0x42e   : > { %p2872_p7 = scmp.ne.s32.totalorder %s3885_s29, %s2871_s28  ;;  %p2876_p10 = scmp.lt.u32.totalorder %s3885_s29, %s3932_s7 }
 0x42f   : > { %p2877_p11 = scmp.lt.u32.totalorder %s2875_s19, %s2871_s28  ;;  %p2879_p0 = scmp.lt.u32.totalorder %s2871_s28, %s3885_s29 }
 0x430   : > { %p2873_p8 = pnand %p2872_p7, %p2454_p12 }
 0x431   : > { %p2878_p13 = por %p2877_p11, %p2876_p10 }
 0x432   : > { %p2874_p9 = pneg %p2873_p8 }
 0x433   : > { %p2880_p1 = por %p2879_p0, %p2878_p13 }
 0x435   : > { %p2881_p2 = pnand %p2880_p1, %p2874_p9 }
 0x437   : > { %2884 = shalt.err (!%p2881_p2)
}
 0x438   : > { %2300 = dma.vmem_to_hbm [thread:$0]  (%p2454_p12), %s2298_s8, %s3876_s20, %s3885_s29, %s3871_s17  }
 0x439 PF: > { %p2674_p3 = scmp.ge.s32.totalorder %s2919_s27, 2  ;;  %s2309_s23 = sand.u32 1, %s2907_s24  }
 0x43a   : > { %s2310_s11 = scalar_lea.sflag [#allocation3], %s2309_s23 }
 0x43b   : > { %p2671_p4 = pnand %p2674_p3, %p3008_p6 }
 0x43d   : > { %2902 = dma.done.wait (!%p2671_p4), %s2310_s11, 128  }
 0x43e   : > { %2904 = vsyncadd (!%p2671_p4), %s2310_s11, 4294967168  ;;  %p17_p5 = scmp.ge.s32.totalorder %s2991_s30, 4   ;;  %s3958_s24 = smov %s2911_s25 }
 0x43f   : > { %s3959_s25 = smov %s2915_s26  ;;  %s3960_s26 = smov %s3002_s10 }
 0x440   : > { %s3961_s27 = smov %s2991_s30  ;;  %19 = sbr.rel (!%p17_p5) target bundleno = 3 (0x3), region = 83 }
 0x447   :  { %2315 = vsyncpa [#allocation3], 1 }
 0x448   :  { %2317 = vsyncpa [#allocation3 + $0x1], 1 }

</bundles_post_ra>
